<compile_context>
chip_gen: v7x
topology: tpu7x:2x2x1
jax: 0.10.0
libtpu: 0.0.40
codegen_flags: <defaults>
</compile_context>

<pallas_src>
import jax
import jax.numpy as jnp
from jax import lax
from jax.experimental import pallas as pl
from jax.experimental.pallas import tpu as pltpu


# ---------------------------------------------------------------------------
# Pallas kernel
# ---------------------------------------------------------------------------
def bilstm_kernel(x_ref, w0_ref, w1_ref, wfc_ref, b_ref, out_ref,
                  xpf_ref, xpr_ref, l0f_ref, l0r_ref, xp1_ref):
    T, Bp, IN_P = x_ref.shape
    H = w1_ref.shape[1] // 4
    F = wfc_ref.shape[1]

    # ---- layer 0: hoisted input projection (one matmul for both directions) --
    x2d = x_ref[...].reshape(T * Bp, IN_P)
    wx0 = w0_ref[2 * H:2 * H + IN_P, :]                       # (IN_P, 16H)
    xp_all = (jnp.dot(x2d, wx0, preferred_element_type=jnp.float32)
              + b_ref[:, 0:16 * H])                            # (T*Bp, 16H), biases folded
    xpf_ref[...] = xp_all[:, 0:8 * H].reshape(T, Bp, 8 * H)    # fwd gate pre-acts
    xpr_ref[...] = xp_all[:, 8 * H:16 * H].reshape(T, Bp, 8 * H)  # rev gate pre-acts

    wr0 = w0_ref[0:2 * H, 0:8 * H]                             # (2H, 8H) block-diag recurrent

    # ---- layer 0: fused fwd+rev recurrence ----------------------------------
    # h/c are (Bp, 2H) = [fwd | rev]; gates are (Bp, 8H) gate-type grouped:
    # [i_f,i_r,f_f,f_r,g_f,g_r,o_f,o_r].  Fwd consumes x[s], rev consumes x[T-1-s].
    def l0_body(s, carry):
        h, c = carry
        g = (xpf_ref[s] + xpr_ref[T - 1 - s]
             + jnp.dot(h, wr0, preferred_element_type=jnp.float32))
        i = jax.nn.sigmoid(g[:, 0:2 * H])
        f = jax.nn.sigmoid(g[:, 2 * H:4 * H])
        gg = jnp.tanh(g[:, 4 * H:6 * H])
        o = jax.nn.sigmoid(g[:, 6 * H:8 * H])
        c = f * c + i * gg
        h = o * jnp.tanh(c)
        l0f_ref[s] = h[:, 0:H]              # fwd output at time s
        l0r_ref[T - 1 - s] = h[:, H:2 * H]  # rev output at time T-1-s
        return h, c

    zero2 = jnp.zeros((Bp, 2 * H), jnp.float32)
    lax.fori_loop(0, T, l0_body, (zero2, zero2), unroll=True)

    # ---- layer 1 forward: hoisted input projection (no per-step concat) ------
    l0f2 = l0f_ref[...].reshape(T * Bp, H)
    l0r2 = l0r_ref[...].reshape(T * Bp, H)
    xp1 = (jnp.dot(l0f2, w1_ref[0:H, :], preferred_element_type=jnp.float32)
           + jnp.dot(l0r2, w1_ref[H:2 * H, :], preferred_element_type=jnp.float32)
           + b_ref[:, 16 * H:20 * H])
    xp1_ref[...] = xp1.reshape(T, Bp, 4 * H)

    w1h = w1_ref[4 * H:5 * H, :]                               # (H, 4H)

    def l1_body(t, carry):
        h, c = carry
        g = xp1_ref[t] + jnp.dot(h, w1h, preferred_element_type=jnp.float32)
        i = jax.nn.sigmoid(g[:, 0:H])
        f = jax.nn.sigmoid(g[:, H:2 * H])
        gg = jnp.tanh(g[:, 2 * H:3 * H])
        o = jax.nn.sigmoid(g[:, 3 * H:4 * H])
        c = f * c + i * gg
        h = o * jnp.tanh(c)
        return h, c

    zero1 = jnp.zeros((Bp, H), jnp.float32)
    h1f, _ = lax.fori_loop(0, T, l1_body, (zero1, zero1), unroll=True)

    # ---- layer 1 reverse: single exact step ----------------------------------
    # Only out[:, -1, H:] of the bi-LSTM feeds the head; that is the reverse
    # cell's output after consuming timestep T-1 only (its FIRST step).  With
    # h_0 = c_0 = 0, the recurrent matmul and the forget-gate term vanish
    # exactly.  NOTE: this shortcut is only valid while the head consumes just
    # the last timestep of the top layer.
    g1r = (jnp.dot(l0f_ref[T - 1], w1_ref[2 * H:3 * H, :],
                   preferred_element_type=jnp.float32)
           + jnp.dot(l0r_ref[T - 1], w1_ref[3 * H:4 * H, :],
                     preferred_element_type=jnp.float32)
           + b_ref[:, 20 * H:24 * H])
    i_r = jax.nn.sigmoid(g1r[:, 0:H])
    g_r = jnp.tanh(g1r[:, 2 * H:3 * H])
    o_r = jax.nn.sigmoid(g1r[:, 3 * H:4 * H])
    h1r = o_r * jnp.tanh(i_r * g_r)

    # ---- head: relu -> fc1 -> relu -> (dropout p=0 => identity) -> fc2 -------
    rf = jnp.maximum(h1f, 0.0)
    rr = jnp.maximum(h1r, 0.0)
    z = (jnp.dot(rf, wfc_ref[0:H, :], preferred_element_type=jnp.float32)
         + jnp.dot(rr, wfc_ref[H:2 * H, :], preferred_element_type=jnp.float32)
         + b_ref[:, 24 * H:24 * H + F])
    z = jnp.maximum(z, 0.0)
    y = jnp.dot(z, wfc_ref[2 * H:2 * H + F, :],
                preferred_element_type=jnp.float32)            # col 0 = fc2 result
    out_ref[...] = y[:, 0:1] + b_ref[:, 24 * H + F:24 * H + F + 1]


# ---------------------------------------------------------------------------
# Wrapper: weight reordering / slab packing / pallas_call
# ---------------------------------------------------------------------------
def _to_fused_cols(m4h, direction, H):
    """Scatter (rows, 4H) [i,f,g,o] columns into (rows, 8H) gate-grouped layout.

    Fused column order: [i_f, i_r, f_f, f_r, g_f, g_r, o_f, o_r]; `direction`
    is 0 (forward) or 1 (reverse)."""
    rows = m4h.shape[0]
    out = jnp.zeros((rows, 8 * H), jnp.float32)
    for k in range(4):
        lo = 2 * k * H + direction * H
        out = out.at[:, lo:lo + H].set(m4h[:, k * H:(k + 1) * H])
    return out


@jax.jit
def bilstm_forward(x, p):
    """x: (batch, seq, 6) float32.  Returns (batch, 1) float32."""
    B, T, IN = x.shape
    H = p["weight_hh_l0"].shape[1]
    F = p["fc1_w"].shape[0]
    Bp = 8      # pad batch to a full sublane group
    IN_P = 8    # pad feature dim (zero columns)

    f32 = lambda a: a.astype(jnp.float32)

    # time-major, batch- and feature-padded input
    x_tm = jnp.zeros((T, Bp, IN_P), jnp.float32)
    x_tm = x_tm.at[:, :B, :IN].set(jnp.transpose(f32(x), (1, 0, 2)))

    # ---- layer-0 slab: rows [0:2H) fused block-diag recurrent, [2H:2H+8) input W
    a0f = jnp.zeros((IN_P, 4 * H), jnp.float32).at[:IN].set(f32(p["weight_ih_l0"].T))
    a0r = jnp.zeros((IN_P, 4 * H), jnp.float32).at[:IN].set(f32(p["weight_ih_l0_reverse"].T))
    wx0 = jnp.concatenate([_to_fused_cols(a0f, 0, H),
                           _to_fused_cols(a0r, 1, H)], axis=1)          # (8, 16H)
    wr0 = jnp.concatenate([_to_fused_cols(f32(p["weight_hh_l0"].T), 0, H),
                           _to_fused_cols(f32(p["weight_hh_l0_reverse"].T), 1, H)],
                          axis=0)                                       # (2H, 8H)
    w0 = jnp.zeros((2 * H + IN_P, 16 * H), jnp.float32)
    w0 = w0.at[:2 * H, :8 * H].set(wr0)
    w0 = w0.at[2 * H:, :].set(wx0)

    # ---- layer-1 slab: rows [0:2H)=W_ih_l1^T, [2H:4H)=W_ih_l1_rev^T, [4H:5H)=W_hh_l1^T
    # (W_hh_l1_reverse is not needed: h_0 = 0 and only one reverse step is taken.)
    w1 = jnp.concatenate([f32(p["weight_ih_l1"].T),
                          f32(p["weight_ih_l1_reverse"].T),
                          f32(p["weight_hh_l1"].T)], axis=0)            # (5H, 4H)

    # ---- fc slab: rows [0:2H)=fc1_w^T, rows [2H:2H+F)=fc2_w^T zero-padded to (F,F)
    fc2t = jnp.zeros((F, F), jnp.float32).at[:, 0:1].set(f32(p["fc2_w"].T))
    wfc = jnp.concatenate([f32(p["fc1_w"].T), fc2t], axis=0)            # (2H+F, F)

    # ---- bias slab (lane-concatenated, biases folded ih+hh) ----
    b0f8 = _to_fused_cols(f32(p["bias_ih_l0"] + p["bias_hh_l0"])[None, :], 0, H)
    b0r8 = _to_fused_cols(f32(p["bias_ih_l0_reverse"] + p["bias_hh_l0_reverse"])[None, :], 1, H)
    BW = 24 * H + F + 128
    bias = jnp.zeros((1, BW), jnp.float32)
    bias = bias.at[:, 0:8 * H].set(b0f8)
    bias = bias.at[:, 8 * H:16 * H].set(b0r8)
    bias = bias.at[:, 16 * H:20 * H].set(f32(p["bias_ih_l1"] + p["bias_hh_l1"])[None, :])
    bias = bias.at[:, 20 * H:24 * H].set(
        f32(p["bias_ih_l1_reverse"] + p["bias_hh_l1_reverse"])[None, :])
    bias = bias.at[:, 24 * H:24 * H + F].set(f32(p["fc1_b"])[None, :])
    bias = bias.at[:, 24 * H + F:24 * H + F + 1].set(f32(p["fc2_b"])[None, :])

    vmem = pl.BlockSpec(memory_space=pltpu.MemorySpace.VMEM)
    out = pl.pallas_call(
        bilstm_kernel,
        out_shape=jax.ShapeDtypeStruct((Bp, 1), jnp.float32),
        in_specs=[vmem] * 5,
        out_specs=vmem,
        scratch_shapes=[
            pltpu.VMEM((T, Bp, 8 * H), jnp.float32),   # layer-0 fwd input projections
            pltpu.VMEM((T, Bp, 8 * H), jnp.float32),   # layer-0 rev input projections
            pltpu.VMEM((T, Bp, H), jnp.float32),       # layer-0 fwd outputs
            pltpu.VMEM((T, Bp, H), jnp.float32),       # layer-0 rev outputs
            pltpu.VMEM((T, Bp, 4 * H), jnp.float32),   # layer-1 fwd input projections
        ],
    )(x_tm, w0, w1, wfc, bias)
    return out[:B]


# ---------------------------------------------------------------------------
# Deterministic parameter init (shapes follow nn.LSTM / nn.Linear in __init__)
# ---------------------------------------------------------------------------
def init_params(key, input_size, hidden_size, fc_features):
    H, F = hidden_size, fc_features
    k = 1.0 / jnp.sqrt(jnp.float32(H))
    names_shapes = [
        ("weight_ih_l0", (4 * H, input_size)), ("weight_hh_l0", (4 * H, H)),
        ("bias_ih_l0", (4 * H,)), ("bias_hh_l0", (4 * H,)),
        ("weight_ih_l0_reverse", (4 * H, input_size)), ("weight_hh_l0_reverse", (4 * H, H)),
        ("bias_ih_l0_reverse", (4 * H,)), ("bias_hh_l0_reverse", (4 * H,)),
        ("weight_ih_l1", (4 * H, 2 * H)), ("weight_hh_l1", (4 * H, H)),
        ("bias_ih_l1", (4 * H,)), ("bias_hh_l1", (4 * H,)),
        ("weight_ih_l1_reverse", (4 * H, 2 * H)), ("weight_hh_l1_reverse", (4 * H, H)),
        ("bias_ih_l1_reverse", (4 * H,)), ("bias_hh_l1_reverse", (4 * H,)),
        ("fc1_w", (F, 2 * H)), ("fc1_b", (F,)),
        ("fc2_w", (1, F)), ("fc2_b", (1,)),
    ]
    keys = jax.random.split(key, len(names_shapes))
    return {name: jax.random.uniform(kk, shape, jnp.float32, -k, k)
            for kk, (name, shape) in zip(keys, names_shapes)}


# ---------------------------------------------------------------------------
# Pure-JAX reference (same semantics as the PyTorch module, eval mode)
# ---------------------------------------------------------------------------
def reference_forward(x, p):
    B, T, _ = x.shape
    H = p["weight_hh_l0"].shape[1]

    def run_dir(inp, wih, whh, bih, bhh, reverse):
        h = jnp.zeros((B, H), jnp.float32)
        c = jnp.zeros((B, H), jnp.float32)
        seq = [None] * T
        ts = range(T - 1, -1, -1) if reverse else range(T)
        for t in ts:
            gates = inp[:, t, :] @ wih.T + h @ whh.T + bih + bhh
            i = jax.nn.sigmoid(gates[:, :H])
            f = jax.nn.sigmoid(gates[:, H:2 * H])
            g = jnp.tanh(gates[:, 2 * H:3 * H])
            o = jax.nn.sigmoid(gates[:, 3 * H:])
            c = f * c + i * g
            h = o * jnp.tanh(c)
            seq[t] = h
        return jnp.stack(seq, axis=1)

    l0 = jnp.concatenate(
        [run_dir(x, p["weight_ih_l0"], p["weight_hh_l0"],
                 p["bias_ih_l0"], p["bias_hh_l0"], False),
         run_dir(x, p["weight_ih_l0_reverse"], p["weight_hh_l0_reverse"],
                 p["bias_ih_l0_reverse"], p["bias_hh_l0_reverse"], True)], axis=-1)
    l1 = jnp.concatenate(
        [run_dir(l0, p["weight_ih_l1"], p["weight_hh_l1"],
                 p["bias_ih_l1"], p["bias_hh_l1"], False),
         run_dir(l0, p["weight_ih_l1_reverse"], p["weight_hh_l1_reverse"],
                 p["bias_ih_l1_reverse"], p["bias_hh_l1_reverse"], True)], axis=-1)

    out = l1[:, -1, :]
    out = jnp.maximum(out, 0.0)
    out = jnp.maximum(out @ p["fc1_w"].T + p["fc1_b"], 0.0)
    out = out @ p["fc2_w"].T + p["fc2_b"]      # dropout p=0.0 -> identity
    return out


# ---------------------------------------------------------------------------
if __name__ == "__main__":
    # Small shapes consistent with the module: input_size fixed to 6 by
    # nn.LSTM(input_size=6); small hidden / fc widths.
    B, T, IN, H, F = 2, 8, 6, 32, 128

    root = jax.random.PRNGKey(0)
    k_params, k_x = jax.random.split(root)
    params = init_params(k_params, IN, H, F)
    x = jax.random.normal(k_x, (B, T, IN), jnp.float32)

    out = bilstm_forward(x, params)
    jax.block_until_ready(out)

    ref = reference_forward(x, params)
    assert out.shape == (B, 1)
    assert jnp.allclose(out, ref, atol=1e-4, rtol=1e-4), (out, ref)

    print("KERNEL_OK")
</pallas_src>

<mosaic_0001>
module attributes {stable_mosaic.version = 11 : i64} {
  func.func @bilstm_kernel(%arg0: memref<8x8x8xf32, #tpu.memory_space<vmem>>, %arg1: memref<72x512xf32, #tpu.memory_space<vmem>>, %arg2: memref<160x128xf32, #tpu.memory_space<vmem>>, %arg3: memref<192x128xf32, #tpu.memory_space<vmem>>, %arg4: memref<1x1024xf32, #tpu.memory_space<vmem>>, %arg5: memref<8x1xf32, #tpu.memory_space<vmem>>, %arg6: memref<8x8x256xf32, #tpu.memory_space<vmem>>, %arg7: memref<8x8x256xf32, #tpu.memory_space<vmem>>, %arg8: memref<8x8x32xf32, #tpu.memory_space<vmem>>, %arg9: memref<8x8x32xf32, #tpu.memory_space<vmem>>, %arg10: memref<8x8x128xf32, #tpu.memory_space<vmem>>) attributes {dimension_semantics = [], scalar_prefetch = 0 : i64, scratch_operands = 5 : i64, tpu.core_type = #tpu.core_type<tc>} {
    %c0 = arith.constant 0 : index
    %c0_0 = arith.constant 0 : index
    %c0_1 = arith.constant 0 : index
    %0 = vector.load %arg0[%c0, %c0_0, %c0_1] : memref<8x8x8xf32, #tpu.memory_space<vmem>>, vector<8x8x8xf32>
    %1 = vector.shape_cast %0 : vector<8x8x8xf32> to vector<64x8xf32>
    %c64 = arith.constant 64 : index
    %c0_2 = arith.constant 0 : index
    %2 = vector.load %arg1[%c64, %c0_2] : memref<72x512xf32, #tpu.memory_space<vmem>>, vector<8x512xf32>
    %cst = arith.constant dense<0.000000e+00> : vector<64x512xf32>
    %3 = tpu.matmul %1, %2, %cst {dimension_numbers = #tpu.dot_dimension_numbers<[1], [0], [0], [1], [0, 0, 1, 1], [], []>} : vector<64x8xf32>, vector<8x512xf32>, vector<64x512xf32> -> vector<64x512xf32>
    %c0_3 = arith.constant 0 : index
    %c0_4 = arith.constant 0 : index
    %4 = vector.load %arg4[%c0_3, %c0_4] : memref<1x1024xf32, #tpu.memory_space<vmem>>, vector<1x512xf32>
    %5 = vector.broadcast %4 : vector<1x512xf32> to vector<64x512xf32>
    %6 = arith.addf %3, %5 : vector<64x512xf32>
    %7 = vector.extract_strided_slice %6 {offsets = [0, 0], sizes = [64, 256], strides = [1, 1]} : vector<64x512xf32> to vector<64x256xf32>
    %8 = vector.shape_cast %7 : vector<64x256xf32> to vector<8x8x256xf32>
    %c0_5 = arith.constant 0 : index
    %c0_6 = arith.constant 0 : index
    %c0_7 = arith.constant 0 : index
    %9 = vector.load %arg6[%c0_5, %c0_6, %c0_7] : memref<8x8x256xf32, #tpu.memory_space<vmem>>, vector<8x8x256xf32>
    tpu.vector_store %arg6[%c0_5, %c0_6, %c0_7], %8 {strides = array<i32>} : memref<8x8x256xf32, #tpu.memory_space<vmem>>, vector<8x8x256xf32>,
    %10 = vector.extract_strided_slice %6 {offsets = [0, 256], sizes = [64, 256], strides = [1, 1]} : vector<64x512xf32> to vector<64x256xf32>
    %11 = vector.shape_cast %10 : vector<64x256xf32> to vector<8x8x256xf32>
    %c0_8 = arith.constant 0 : index
    %c0_9 = arith.constant 0 : index
    %c0_10 = arith.constant 0 : index
    %12 = vector.load %arg7[%c0_8, %c0_9, %c0_10] : memref<8x8x256xf32, #tpu.memory_space<vmem>>, vector<8x8x256xf32>
    tpu.vector_store %arg7[%c0_8, %c0_9, %c0_10], %11 {strides = array<i32>} : memref<8x8x256xf32, #tpu.memory_space<vmem>>, vector<8x8x256xf32>,
    %c0_11 = arith.constant 0 : index
    %c0_12 = arith.constant 0 : index
    %13 = vector.load %arg1[%c0_11, %c0_12] : memref<72x512xf32, #tpu.memory_space<vmem>>, vector<64x256xf32>
    %cst_13 = arith.constant 0.000000e+00 : f32
    %14 = vector.broadcast %cst_13 : f32 to vector<8x64xf32>
    %c0_i32 = arith.constant 0 : i32
    %15 = arith.index_cast %c0_i32 : i32 to index
    %c0_14 = arith.constant 0 : index
    %c0_15 = arith.constant 0 : index
    %16 = vector.load %arg6[%15, %c0_14, %c0_15] : memref<8x8x256xf32, #tpu.memory_space<vmem>>, vector<1x8x256xf32>
    %17 = vector.shape_cast %16 : vector<1x8x256xf32> to vector<8x256xf32>
    %c7_i32 = arith.constant 7 : i32
    %18 = arith.subi %c7_i32, %c0_i32 : i32
    %19 = arith.index_cast %18 : i32 to index
    %c0_16 = arith.constant 0 : index
    %c0_17 = arith.constant 0 : index
    %20 = vector.load %arg7[%19, %c0_16, %c0_17] : memref<8x8x256xf32, #tpu.memory_space<vmem>>, vector<1x8x256xf32>
    %21 = vector.shape_cast %20 : vector<1x8x256xf32> to vector<8x256xf32>
    %22 = arith.addf %17, %21 : vector<8x256xf32>
    %cst_18 = arith.constant dense<0.000000e+00> : vector<8x256xf32>
    %23 = tpu.matmul %14, %13, %cst_18 {dimension_numbers = #tpu.dot_dimension_numbers<[1], [0], [0], [1], [0, 0, 1, 1], [], []>} : vector<8x64xf32>, vector<64x256xf32>, vector<8x256xf32> -> vector<8x256xf32>
    %24 = arith.addf %22, %23 : vector<8x256xf32>
    %25 = vector.extract_strided_slice %24 {offsets = [0, 0], sizes = [8, 64], strides = [1, 1]} : vector<8x256xf32> to vector<8x64xf32>
    %26 = arith.negf %25 : vector<8x64xf32>
    %27 = math.exp %26 : vector<8x64xf32>
    %cst_19 = arith.constant 1.000000e+00 : f32
    %28 = vector.broadcast %cst_19 : f32 to vector<8x64xf32>
    %29 = arith.addf %28, %27 : vector<8x64xf32>
    %30 = arith.divf %28, %29 : vector<8x64xf32>
    %31 = vector.extract_strided_slice %24 {offsets = [0, 64], sizes = [8, 64], strides = [1, 1]} : vector<8x256xf32> to vector<8x64xf32>
    %32 = arith.negf %31 : vector<8x64xf32>
    %33 = math.exp %32 : vector<8x64xf32>
    %cst_20 = arith.constant 1.000000e+00 : f32
    %34 = vector.broadcast %cst_20 : f32 to vector<8x64xf32>
    %35 = arith.addf %34, %33 : vector<8x64xf32>
    %36 = arith.divf %34, %35 : vector<8x64xf32>
    %37 = vector.extract_strided_slice %24 {offsets = [0, 128], sizes = [8, 64], strides = [1, 1]} : vector<8x256xf32> to vector<8x64xf32>
    %38 = math.tanh %37 : vector<8x64xf32>
    %39 = vector.extract_strided_slice %24 {offsets = [0, 192], sizes = [8, 64], strides = [1, 1]} : vector<8x256xf32> to vector<8x64xf32>
    %40 = arith.negf %39 : vector<8x64xf32>
    %41 = math.exp %40 : vector<8x64xf32>
    %cst_21 = arith.constant 1.000000e+00 : f32
    %42 = vector.broadcast %cst_21 : f32 to vector<8x64xf32>
    %43 = arith.addf %42, %41 : vector<8x64xf32>
    %44 = arith.divf %42, %43 : vector<8x64xf32>
    %45 = arith.mulf %36, %14 : vector<8x64xf32>
    %46 = arith.mulf %30, %38 : vector<8x64xf32>
    %47 = arith.addf %45, %46 : vector<8x64xf32>
    %48 = math.tanh %47 : vector<8x64xf32>
    %49 = arith.mulf %44, %48 : vector<8x64xf32>
    %50 = vector.extract_strided_slice %49 {offsets = [0, 0], sizes = [8, 32], strides = [1, 1]} : vector<8x64xf32> to vector<8x32xf32>
    %51 = arith.index_cast %c0_i32 : i32 to index
    %c0_22 = arith.constant 0 : index
    %c0_23 = arith.constant 0 : index
    %52 = vector.load %arg8[%51, %c0_22, %c0_23] : memref<8x8x32xf32, #tpu.memory_space<vmem>>, vector<1x8x32xf32>
    %53 = vector.shape_cast %52 : vector<1x8x32xf32> to vector<8x32xf32>
    %54 = vector.shape_cast %50 : vector<8x32xf32> to vector<1x8x32xf32>
    tpu.vector_store %arg8[%51, %c0_22, %c0_23], %54 {strides = array<i32>} : memref<8x8x32xf32, #tpu.memory_space<vmem>>, vector<1x8x32xf32>,
    %55 = vector.extract_strided_slice %49 {offsets = [0, 32], sizes = [8, 32], strides = [1, 1]} : vector<8x64xf32> to vector<8x32xf32>
    %c7_i32_24 = arith.constant 7 : i32
    %56 = arith.subi %c7_i32_24, %c0_i32 : i32
    %57 = arith.index_cast %56 : i32 to index
    %c0_25 = arith.constant 0 : index
    %c0_26 = arith.constant 0 : index
    %58 = vector.load %arg9[%57, %c0_25, %c0_26] : memref<8x8x32xf32, #tpu.memory_space<vmem>>, vector<1x8x32xf32>
    %59 = vector.shape_cast %58 : vector<1x8x32xf32> to vector<8x32xf32>
    %60 = vector.shape_cast %55 : vector<8x32xf32> to vector<1x8x32xf32>
    tpu.vector_store %arg9[%57, %c0_25, %c0_26], %60 {strides = array<i32>} : memref<8x8x32xf32, #tpu.memory_space<vmem>>, vector<1x8x32xf32>,
    %c1_i32 = arith.constant 1 : i32
    %61 = arith.index_cast %c1_i32 : i32 to index
    %c0_27 = arith.constant 0 : index
    %c0_28 = arith.constant 0 : index
    %62 = vector.load %arg6[%61, %c0_27, %c0_28] : memref<8x8x256xf32, #tpu.memory_space<vmem>>, vector<1x8x256xf32>
    %63 = vector.shape_cast %62 : vector<1x8x256xf32> to vector<8x256xf32>
    %c7_i32_29 = arith.constant 7 : i32
    %64 = arith.subi %c7_i32_29, %c1_i32 : i32
    %65 = arith.index_cast %64 : i32 to index
    %c0_30 = arith.constant 0 : index
    %c0_31 = arith.constant 0 : index
    %66 = vector.load %arg7[%65, %c0_30, %c0_31] : memref<8x8x256xf32, #tpu.memory_space<vmem>>, vector<1x8x256xf32>
    %67 = vector.shape_cast %66 : vector<1x8x256xf32> to vector<8x256xf32>
    %68 = arith.addf %63, %67 : vector<8x256xf32>
    %cst_32 = arith.constant dense<0.000000e+00> : vector<8x256xf32>
    %69 = tpu.matmul %49, %13, %cst_32 {dimension_numbers = #tpu.dot_dimension_numbers<[1], [0], [0], [1], [0, 0, 1, 1], [], []>} : vector<8x64xf32>, vector<64x256xf32>, vector<8x256xf32> -> vector<8x256xf32>
    %70 = arith.addf %68, %69 : vector<8x256xf32>
    %71 = vector.extract_strided_slice %70 {offsets = [0, 0], sizes = [8, 64], strides = [1, 1]} : vector<8x256xf32> to vector<8x64xf32>
    %72 = arith.negf %71 : vector<8x64xf32>
    %73 = math.exp %72 : vector<8x64xf32>
    %cst_33 = arith.constant 1.000000e+00 : f32
    %74 = vector.broadcast %cst_33 : f32 to vector<8x64xf32>
    %75 = arith.addf %74, %73 : vector<8x64xf32>
    %76 = arith.divf %74, %75 : vector<8x64xf32>
    %77 = vector.extract_strided_slice %70 {offsets = [0, 64], sizes = [8, 64], strides = [1, 1]} : vector<8x256xf32> to vector<8x64xf32>
    %78 = arith.negf %77 : vector<8x64xf32>
    %79 = math.exp %78 : vector<8x64xf32>
    %cst_34 = arith.constant 1.000000e+00 : f32
    %80 = vector.broadcast %cst_34 : f32 to vector<8x64xf32>
    %81 = arith.addf %80, %79 : vector<8x64xf32>
    %82 = arith.divf %80, %81 : vector<8x64xf32>
    %83 = vector.extract_strided_slice %70 {offsets = [0, 128], sizes = [8, 64], strides = [1, 1]} : vector<8x256xf32> to vector<8x64xf32>
    %84 = math.tanh %83 : vector<8x64xf32>
    %85 = vector.extract_strided_slice %70 {offsets = [0, 192], sizes = [8, 64], strides = [1, 1]} : vector<8x256xf32> to vector<8x64xf32>
    %86 = arith.negf %85 : vector<8x64xf32>
    %87 = math.exp %86 : vector<8x64xf32>
    %cst_35 = arith.constant 1.000000e+00 : f32
    %88 = vector.broadcast %cst_35 : f32 to vector<8x64xf32>
    %89 = arith.addf %88, %87 : vector<8x64xf32>
    %90 = arith.divf %88, %89 : vector<8x64xf32>
    %91 = arith.mulf %82, %47 : vector<8x64xf32>
    %92 = arith.mulf %76, %84 : vector<8x64xf32>
    %93 = arith.addf %91, %92 : vector<8x64xf32>
    %94 = math.tanh %93 : vector<8x64xf32>
    %95 = arith.mulf %90, %94 : vector<8x64xf32>
    %96 = vector.extract_strided_slice %95 {offsets = [0, 0], sizes = [8, 32], strides = [1, 1]} : vector<8x64xf32> to vector<8x32xf32>
    %97 = arith.index_cast %c1_i32 : i32 to index
    %c0_36 = arith.constant 0 : index
    %c0_37 = arith.constant 0 : index
    %98 = vector.load %arg8[%97, %c0_36, %c0_37] : memref<8x8x32xf32, #tpu.memory_space<vmem>>, vector<1x8x32xf32>
    %99 = vector.shape_cast %98 : vector<1x8x32xf32> to vector<8x32xf32>
    %100 = vector.shape_cast %96 : vector<8x32xf32> to vector<1x8x32xf32>
    tpu.vector_store %arg8[%97, %c0_36, %c0_37], %100 {strides = array<i32>} : memref<8x8x32xf32, #tpu.memory_space<vmem>>, vector<1x8x32xf32>,
    %101 = vector.extract_strided_slice %95 {offsets = [0, 32], sizes = [8, 32], strides = [1, 1]} : vector<8x64xf32> to vector<8x32xf32>
    %c7_i32_38 = arith.constant 7 : i32
    %102 = arith.subi %c7_i32_38, %c1_i32 : i32
    %103 = arith.index_cast %102 : i32 to index
    %c0_39 = arith.constant 0 : index
    %c0_40 = arith.constant 0 : index
    %104 = vector.load %arg9[%103, %c0_39, %c0_40] : memref<8x8x32xf32, #tpu.memory_space<vmem>>, vector<1x8x32xf32>
    %105 = vector.shape_cast %104 : vector<1x8x32xf32> to vector<8x32xf32>
    %106 = vector.shape_cast %101 : vector<8x32xf32> to vector<1x8x32xf32>
    tpu.vector_store %arg9[%103, %c0_39, %c0_40], %106 {strides = array<i32>} : memref<8x8x32xf32, #tpu.memory_space<vmem>>, vector<1x8x32xf32>,
    %c2_i32 = arith.constant 2 : i32
    %107 = arith.index_cast %c2_i32 : i32 to index
    %c0_41 = arith.constant 0 : index
    %c0_42 = arith.constant 0 : index
    %108 = vector.load %arg6[%107, %c0_41, %c0_42] : memref<8x8x256xf32, #tpu.memory_space<vmem>>, vector<1x8x256xf32>
    %109 = vector.shape_cast %108 : vector<1x8x256xf32> to vector<8x256xf32>
    %c7_i32_43 = arith.constant 7 : i32
    %110 = arith.subi %c7_i32_43, %c2_i32 : i32
    %111 = arith.index_cast %110 : i32 to index
    %c0_44 = arith.constant 0 : index
    %c0_45 = arith.constant 0 : index
    %112 = vector.load %arg7[%111, %c0_44, %c0_45] : memref<8x8x256xf32, #tpu.memory_space<vmem>>, vector<1x8x256xf32>
    %113 = vector.shape_cast %112 : vector<1x8x256xf32> to vector<8x256xf32>
    %114 = arith.addf %109, %113 : vector<8x256xf32>
    %cst_46 = arith.constant dense<0.000000e+00> : vector<8x256xf32>
    %115 = tpu.matmul %95, %13, %cst_46 {dimension_numbers = #tpu.dot_dimension_numbers<[1], [0], [0], [1], [0, 0, 1, 1], [], []>} : vector<8x64xf32>, vector<64x256xf32>, vector<8x256xf32> -> vector<8x256xf32>
    %116 = arith.addf %114, %115 : vector<8x256xf32>
    %117 = vector.extract_strided_slice %116 {offsets = [0, 0], sizes = [8, 64], strides = [1, 1]} : vector<8x256xf32> to vector<8x64xf32>
    %118 = arith.negf %117 : vector<8x64xf32>
    %119 = math.exp %118 : vector<8x64xf32>
    %cst_47 = arith.constant 1.000000e+00 : f32
    %120 = vector.broadcast %cst_47 : f32 to vector<8x64xf32>
    %121 = arith.addf %120, %119 : vector<8x64xf32>
    %122 = arith.divf %120, %121 : vector<8x64xf32>
    %123 = vector.extract_strided_slice %116 {offsets = [0, 64], sizes = [8, 64], strides = [1, 1]} : vector<8x256xf32> to vector<8x64xf32>
    %124 = arith.negf %123 : vector<8x64xf32>
    %125 = math.exp %124 : vector<8x64xf32>
    %cst_48 = arith.constant 1.000000e+00 : f32
    %126 = vector.broadcast %cst_48 : f32 to vector<8x64xf32>
    %127 = arith.addf %126, %125 : vector<8x64xf32>
    %128 = arith.divf %126, %127 : vector<8x64xf32>
    %129 = vector.extract_strided_slice %116 {offsets = [0, 128], sizes = [8, 64], strides = [1, 1]} : vector<8x256xf32> to vector<8x64xf32>
    %130 = math.tanh %129 : vector<8x64xf32>
    %131 = vector.extract_strided_slice %116 {offsets = [0, 192], sizes = [8, 64], strides = [1, 1]} : vector<8x256xf32> to vector<8x64xf32>
    %132 = arith.negf %131 : vector<8x64xf32>
    %133 = math.exp %132 : vector<8x64xf32>
    %cst_49 = arith.constant 1.000000e+00 : f32
    %134 = vector.broadcast %cst_49 : f32 to vector<8x64xf32>
    %135 = arith.addf %134, %133 : vector<8x64xf32>
    %136 = arith.divf %134, %135 : vector<8x64xf32>
    %137 = arith.mulf %128, %93 : vector<8x64xf32>
    %138 = arith.mulf %122, %130 : vector<8x64xf32>
    %139 = arith.addf %137, %138 : vector<8x64xf32>
    %140 = math.tanh %139 : vector<8x64xf32>
    %141 = arith.mulf %136, %140 : vector<8x64xf32>
    %142 = vector.extract_strided_slice %141 {offsets = [0, 0], sizes = [8, 32], strides = [1, 1]} : vector<8x64xf32> to vector<8x32xf32>
    %143 = arith.index_cast %c2_i32 : i32 to index
    %c0_50 = arith.constant 0 : index
    %c0_51 = arith.constant 0 : index
    %144 = vector.load %arg8[%143, %c0_50, %c0_51] : memref<8x8x32xf32, #tpu.memory_space<vmem>>, vector<1x8x32xf32>
    %145 = vector.shape_cast %144 : vector<1x8x32xf32> to vector<8x32xf32>
    %146 = vector.shape_cast %142 : vector<8x32xf32> to vector<1x8x32xf32>
    tpu.vector_store %arg8[%143, %c0_50, %c0_51], %146 {strides = array<i32>} : memref<8x8x32xf32, #tpu.memory_space<vmem>>, vector<1x8x32xf32>,
    %147 = vector.extract_strided_slice %141 {offsets = [0, 32], sizes = [8, 32], strides = [1, 1]} : vector<8x64xf32> to vector<8x32xf32>
    %c7_i32_52 = arith.constant 7 : i32
    %148 = arith.subi %c7_i32_52, %c2_i32 : i32
    %149 = arith.index_cast %148 : i32 to index
    %c0_53 = arith.constant 0 : index
    %c0_54 = arith.constant 0 : index
    %150 = vector.load %arg9[%149, %c0_53, %c0_54] : memref<8x8x32xf32, #tpu.memory_space<vmem>>, vector<1x8x32xf32>
    %151 = vector.shape_cast %150 : vector<1x8x32xf32> to vector<8x32xf32>
    %152 = vector.shape_cast %147 : vector<8x32xf32> to vector<1x8x32xf32>
    tpu.vector_store %arg9[%149, %c0_53, %c0_54], %152 {strides = array<i32>} : memref<8x8x32xf32, #tpu.memory_space<vmem>>, vector<1x8x32xf32>,
    %c3_i32 = arith.constant 3 : i32
    %153 = arith.index_cast %c3_i32 : i32 to index
    %c0_55 = arith.constant 0 : index
    %c0_56 = arith.constant 0 : index
    %154 = vector.load %arg6[%153, %c0_55, %c0_56] : memref<8x8x256xf32, #tpu.memory_space<vmem>>, vector<1x8x256xf32>
    %155 = vector.shape_cast %154 : vector<1x8x256xf32> to vector<8x256xf32>
    %c7_i32_57 = arith.constant 7 : i32
    %156 = arith.subi %c7_i32_57, %c3_i32 : i32
    %157 = arith.index_cast %156 : i32 to index
    %c0_58 = arith.constant 0 : index
    %c0_59 = arith.constant 0 : index
    %158 = vector.load %arg7[%157, %c0_58, %c0_59] : memref<8x8x256xf32, #tpu.memory_space<vmem>>, vector<1x8x256xf32>
    %159 = vector.shape_cast %158 : vector<1x8x256xf32> to vector<8x256xf32>
    %160 = arith.addf %155, %159 : vector<8x256xf32>
    %cst_60 = arith.constant dense<0.000000e+00> : vector<8x256xf32>
    %161 = tpu.matmul %141, %13, %cst_60 {dimension_numbers = #tpu.dot_dimension_numbers<[1], [0], [0], [1], [0, 0, 1, 1], [], []>} : vector<8x64xf32>, vector<64x256xf32>, vector<8x256xf32> -> vector<8x256xf32>
    %162 = arith.addf %160, %161 : vector<8x256xf32>
    %163 = vector.extract_strided_slice %162 {offsets = [0, 0], sizes = [8, 64], strides = [1, 1]} : vector<8x256xf32> to vector<8x64xf32>
    %164 = arith.negf %163 : vector<8x64xf32>
    %165 = math.exp %164 : vector<8x64xf32>
    %cst_61 = arith.constant 1.000000e+00 : f32
    %166 = vector.broadcast %cst_61 : f32 to vector<8x64xf32>
    %167 = arith.addf %166, %165 : vector<8x64xf32>
    %168 = arith.divf %166, %167 : vector<8x64xf32>
    %169 = vector.extract_strided_slice %162 {offsets = [0, 64], sizes = [8, 64], strides = [1, 1]} : vector<8x256xf32> to vector<8x64xf32>
    %170 = arith.negf %169 : vector<8x64xf32>
    %171 = math.exp %170 : vector<8x64xf32>
    %cst_62 = arith.constant 1.000000e+00 : f32
    %172 = vector.broadcast %cst_62 : f32 to vector<8x64xf32>
    %173 = arith.addf %172, %171 : vector<8x64xf32>
    %174 = arith.divf %172, %173 : vector<8x64xf32>
    %175 = vector.extract_strided_slice %162 {offsets = [0, 128], sizes = [8, 64], strides = [1, 1]} : vector<8x256xf32> to vector<8x64xf32>
    %176 = math.tanh %175 : vector<8x64xf32>
    %177 = vector.extract_strided_slice %162 {offsets = [0, 192], sizes = [8, 64], strides = [1, 1]} : vector<8x256xf32> to vector<8x64xf32>
    %178 = arith.negf %177 : vector<8x64xf32>
    %179 = math.exp %178 : vector<8x64xf32>
    %cst_63 = arith.constant 1.000000e+00 : f32
    %180 = vector.broadcast %cst_63 : f32 to vector<8x64xf32>
    %181 = arith.addf %180, %179 : vector<8x64xf32>
    %182 = arith.divf %180, %181 : vector<8x64xf32>
    %183 = arith.mulf %174, %139 : vector<8x64xf32>
    %184 = arith.mulf %168, %176 : vector<8x64xf32>
    %185 = arith.addf %183, %184 : vector<8x64xf32>
    %186 = math.tanh %185 : vector<8x64xf32>
    %187 = arith.mulf %182, %186 : vector<8x64xf32>
    %188 = vector.extract_strided_slice %187 {offsets = [0, 0], sizes = [8, 32], strides = [1, 1]} : vector<8x64xf32> to vector<8x32xf32>
    %189 = arith.index_cast %c3_i32 : i32 to index
    %c0_64 = arith.constant 0 : index
    %c0_65 = arith.constant 0 : index
    %190 = vector.load %arg8[%189, %c0_64, %c0_65] : memref<8x8x32xf32, #tpu.memory_space<vmem>>, vector<1x8x32xf32>
    %191 = vector.shape_cast %190 : vector<1x8x32xf32> to vector<8x32xf32>
    %192 = vector.shape_cast %188 : vector<8x32xf32> to vector<1x8x32xf32>
    tpu.vector_store %arg8[%189, %c0_64, %c0_65], %192 {strides = array<i32>} : memref<8x8x32xf32, #tpu.memory_space<vmem>>, vector<1x8x32xf32>,
    %193 = vector.extract_strided_slice %187 {offsets = [0, 32], sizes = [8, 32], strides = [1, 1]} : vector<8x64xf32> to vector<8x32xf32>
    %c7_i32_66 = arith.constant 7 : i32
    %194 = arith.subi %c7_i32_66, %c3_i32 : i32
    %195 = arith.index_cast %194 : i32 to index
    %c0_67 = arith.constant 0 : index
    %c0_68 = arith.constant 0 : index
    %196 = vector.load %arg9[%195, %c0_67, %c0_68] : memref<8x8x32xf32, #tpu.memory_space<vmem>>, vector<1x8x32xf32>
    %197 = vector.shape_cast %196 : vector<1x8x32xf32> to vector<8x32xf32>
    %198 = vector.shape_cast %193 : vector<8x32xf32> to vector<1x8x32xf32>
    tpu.vector_store %arg9[%195, %c0_67, %c0_68], %198 {strides = array<i32>} : memref<8x8x32xf32, #tpu.memory_space<vmem>>, vector<1x8x32xf32>,
    %c4_i32 = arith.constant 4 : i32
    %199 = arith.index_cast %c4_i32 : i32 to index
    %c0_69 = arith.constant 0 : index
    %c0_70 = arith.constant 0 : index
    %200 = vector.load %arg6[%199, %c0_69, %c0_70] : memref<8x8x256xf32, #tpu.memory_space<vmem>>, vector<1x8x256xf32>
    %201 = vector.shape_cast %200 : vector<1x8x256xf32> to vector<8x256xf32>
    %c7_i32_71 = arith.constant 7 : i32
    %202 = arith.subi %c7_i32_71, %c4_i32 : i32
    %203 = arith.index_cast %202 : i32 to index
    %c0_72 = arith.constant 0 : index
    %c0_73 = arith.constant 0 : index
    %204 = vector.load %arg7[%203, %c0_72, %c0_73] : memref<8x8x256xf32, #tpu.memory_space<vmem>>, vector<1x8x256xf32>
    %205 = vector.shape_cast %204 : vector<1x8x256xf32> to vector<8x256xf32>
    %206 = arith.addf %201, %205 : vector<8x256xf32>
    %cst_74 = arith.constant dense<0.000000e+00> : vector<8x256xf32>
    %207 = tpu.matmul %187, %13, %cst_74 {dimension_numbers = #tpu.dot_dimension_numbers<[1], [0], [0], [1], [0, 0, 1, 1], [], []>} : vector<8x64xf32>, vector<64x256xf32>, vector<8x256xf32> -> vector<8x256xf32>
    %208 = arith.addf %206, %207 : vector<8x256xf32>
    %209 = vector.extract_strided_slice %208 {offsets = [0, 0], sizes = [8, 64], strides = [1, 1]} : vector<8x256xf32> to vector<8x64xf32>
    %210 = arith.negf %209 : vector<8x64xf32>
    %211 = math.exp %210 : vector<8x64xf32>
    %cst_75 = arith.constant 1.000000e+00 : f32
    %212 = vector.broadcast %cst_75 : f32 to vector<8x64xf32>
    %213 = arith.addf %212, %211 : vector<8x64xf32>
    %214 = arith.divf %212, %213 : vector<8x64xf32>
    %215 = vector.extract_strided_slice %208 {offsets = [0, 64], sizes = [8, 64], strides = [1, 1]} : vector<8x256xf32> to vector<8x64xf32>
    %216 = arith.negf %215 : vector<8x64xf32>
    %217 = math.exp %216 : vector<8x64xf32>
    %cst_76 = arith.constant 1.000000e+00 : f32
    %218 = vector.broadcast %cst_76 : f32 to vector<8x64xf32>
    %219 = arith.addf %218, %217 : vector<8x64xf32>
    %220 = arith.divf %218, %219 : vector<8x64xf32>
    %221 = vector.extract_strided_slice %208 {offsets = [0, 128], sizes = [8, 64], strides = [1, 1]} : vector<8x256xf32> to vector<8x64xf32>
    %222 = math.tanh %221 : vector<8x64xf32>
    %223 = vector.extract_strided_slice %208 {offsets = [0, 192], sizes = [8, 64], strides = [1, 1]} : vector<8x256xf32> to vector<8x64xf32>
    %224 = arith.negf %223 : vector<8x64xf32>
    %225 = math.exp %224 : vector<8x64xf32>
    %cst_77 = arith.constant 1.000000e+00 : f32
    %226 = vector.broadcast %cst_77 : f32 to vector<8x64xf32>
    %227 = arith.addf %226, %225 : vector<8x64xf32>
    %228 = arith.divf %226, %227 : vector<8x64xf32>
    %229 = arith.mulf %220, %185 : vector<8x64xf32>
    %230 = arith.mulf %214, %222 : vector<8x64xf32>
    %231 = arith.addf %229, %230 : vector<8x64xf32>
    %232 = math.tanh %231 : vector<8x64xf32>
    %233 = arith.mulf %228, %232 : vector<8x64xf32>
    %234 = vector.extract_strided_slice %233 {offsets = [0, 0], sizes = [8, 32], strides = [1, 1]} : vector<8x64xf32> to vector<8x32xf32>
    %235 = arith.index_cast %c4_i32 : i32 to index
    %c0_78 = arith.constant 0 : index
    %c0_79 = arith.constant 0 : index
    %236 = vector.load %arg8[%235, %c0_78, %c0_79] : memref<8x8x32xf32, #tpu.memory_space<vmem>>, vector<1x8x32xf32>
    %237 = vector.shape_cast %236 : vector<1x8x32xf32> to vector<8x32xf32>
    %238 = vector.shape_cast %234 : vector<8x32xf32> to vector<1x8x32xf32>
    tpu.vector_store %arg8[%235, %c0_78, %c0_79], %238 {strides = array<i32>} : memref<8x8x32xf32, #tpu.memory_space<vmem>>, vector<1x8x32xf32>,
    %239 = vector.extract_strided_slice %233 {offsets = [0, 32], sizes = [8, 32], strides = [1, 1]} : vector<8x64xf32> to vector<8x32xf32>
    %c7_i32_80 = arith.constant 7 : i32
    %240 = arith.subi %c7_i32_80, %c4_i32 : i32
    %241 = arith.index_cast %240 : i32 to index
    %c0_81 = arith.constant 0 : index
    %c0_82 = arith.constant 0 : index
    %242 = vector.load %arg9[%241, %c0_81, %c0_82] : memref<8x8x32xf32, #tpu.memory_space<vmem>>, vector<1x8x32xf32>
    %243 = vector.shape_cast %242 : vector<1x8x32xf32> to vector<8x32xf32>
    %244 = vector.shape_cast %239 : vector<8x32xf32> to vector<1x8x32xf32>
    tpu.vector_store %arg9[%241, %c0_81, %c0_82], %244 {strides = array<i32>} : memref<8x8x32xf32, #tpu.memory_space<vmem>>, vector<1x8x32xf32>,
    %c5_i32 = arith.constant 5 : i32
    %245 = arith.index_cast %c5_i32 : i32 to index
    %c0_83 = arith.constant 0 : index
    %c0_84 = arith.constant 0 : index
    %246 = vector.load %arg6[%245, %c0_83, %c0_84] : memref<8x8x256xf32, #tpu.memory_space<vmem>>, vector<1x8x256xf32>
    %247 = vector.shape_cast %246 : vector<1x8x256xf32> to vector<8x256xf32>
    %c7_i32_85 = arith.constant 7 : i32
    %248 = arith.subi %c7_i32_85, %c5_i32 : i32
    %249 = arith.index_cast %248 : i32 to index
    %c0_86 = arith.constant 0 : index
    %c0_87 = arith.constant 0 : index
    %250 = vector.load %arg7[%249, %c0_86, %c0_87] : memref<8x8x256xf32, #tpu.memory_space<vmem>>, vector<1x8x256xf32>
    %251 = vector.shape_cast %250 : vector<1x8x256xf32> to vector<8x256xf32>
    %252 = arith.addf %247, %251 : vector<8x256xf32>
    %cst_88 = arith.constant dense<0.000000e+00> : vector<8x256xf32>
    %253 = tpu.matmul %233, %13, %cst_88 {dimension_numbers = #tpu.dot_dimension_numbers<[1], [0], [0], [1], [0, 0, 1, 1], [], []>} : vector<8x64xf32>, vector<64x256xf32>, vector<8x256xf32> -> vector<8x256xf32>
    %254 = arith.addf %252, %253 : vector<8x256xf32>
    %255 = vector.extract_strided_slice %254 {offsets = [0, 0], sizes = [8, 64], strides = [1, 1]} : vector<8x256xf32> to vector<8x64xf32>
    %256 = arith.negf %255 : vector<8x64xf32>
    %257 = math.exp %256 : vector<8x64xf32>
    %cst_89 = arith.constant 1.000000e+00 : f32
    %258 = vector.broadcast %cst_89 : f32 to vector<8x64xf32>
    %259 = arith.addf %258, %257 : vector<8x64xf32>
    %260 = arith.divf %258, %259 : vector<8x64xf32>
    %261 = vector.extract_strided_slice %254 {offsets = [0, 64], sizes = [8, 64], strides = [1, 1]} : vector<8x256xf32> to vector<8x64xf32>
    %262 = arith.negf %261 : vector<8x64xf32>
    %263 = math.exp %262 : vector<8x64xf32>
    %cst_90 = arith.constant 1.000000e+00 : f32
    %264 = vector.broadcast %cst_90 : f32 to vector<8x64xf32>
    %265 = arith.addf %264, %263 : vector<8x64xf32>
    %266 = arith.divf %264, %265 : vector<8x64xf32>
    %267 = vector.extract_strided_slice %254 {offsets = [0, 128], sizes = [8, 64], strides = [1, 1]} : vector<8x256xf32> to vector<8x64xf32>
    %268 = math.tanh %267 : vector<8x64xf32>
    %269 = vector.extract_strided_slice %254 {offsets = [0, 192], sizes = [8, 64], strides = [1, 1]} : vector<8x256xf32> to vector<8x64xf32>
    %270 = arith.negf %269 : vector<8x64xf32>
    %271 = math.exp %270 : vector<8x64xf32>
    %cst_91 = arith.constant 1.000000e+00 : f32
    %272 = vector.broadcast %cst_91 : f32 to vector<8x64xf32>
    %273 = arith.addf %272, %271 : vector<8x64xf32>
    %274 = arith.divf %272, %273 : vector<8x64xf32>
    %275 = arith.mulf %266, %231 : vector<8x64xf32>
    %276 = arith.mulf %260, %268 : vector<8x64xf32>
    %277 = arith.addf %275, %276 : vector<8x64xf32>
    %278 = math.tanh %277 : vector<8x64xf32>
    %279 = arith.mulf %274, %278 : vector<8x64xf32>
    %280 = vector.extract_strided_slice %279 {offsets = [0, 0], sizes = [8, 32], strides = [1, 1]} : vector<8x64xf32> to vector<8x32xf32>
    %281 = arith.index_cast %c5_i32 : i32 to index
    %c0_92 = arith.constant 0 : index
    %c0_93 = arith.constant 0 : index
    %282 = vector.load %arg8[%281, %c0_92, %c0_93] : memref<8x8x32xf32, #tpu.memory_space<vmem>>, vector<1x8x32xf32>
    %283 = vector.shape_cast %282 : vector<1x8x32xf32> to vector<8x32xf32>
    %284 = vector.shape_cast %280 : vector<8x32xf32> to vector<1x8x32xf32>
    tpu.vector_store %arg8[%281, %c0_92, %c0_93], %284 {strides = array<i32>} : memref<8x8x32xf32, #tpu.memory_space<vmem>>, vector<1x8x32xf32>,
    %285 = vector.extract_strided_slice %279 {offsets = [0, 32], sizes = [8, 32], strides = [1, 1]} : vector<8x64xf32> to vector<8x32xf32>
    %c7_i32_94 = arith.constant 7 : i32
    %286 = arith.subi %c7_i32_94, %c5_i32 : i32
    %287 = arith.index_cast %286 : i32 to index
    %c0_95 = arith.constant 0 : index
    %c0_96 = arith.constant 0 : index
    %288 = vector.load %arg9[%287, %c0_95, %c0_96] : memref<8x8x32xf32, #tpu.memory_space<vmem>>, vector<1x8x32xf32>
    %289 = vector.shape_cast %288 : vector<1x8x32xf32> to vector<8x32xf32>
    %290 = vector.shape_cast %285 : vector<8x32xf32> to vector<1x8x32xf32>
    tpu.vector_store %arg9[%287, %c0_95, %c0_96], %290 {strides = array<i32>} : memref<8x8x32xf32, #tpu.memory_space<vmem>>, vector<1x8x32xf32>,
    %c6_i32 = arith.constant 6 : i32
    %291 = arith.index_cast %c6_i32 : i32 to index
    %c0_97 = arith.constant 0 : index
    %c0_98 = arith.constant 0 : index
    %292 = vector.load %arg6[%291, %c0_97, %c0_98] : memref<8x8x256xf32, #tpu.memory_space<vmem>>, vector<1x8x256xf32>
    %293 = vector.shape_cast %292 : vector<1x8x256xf32> to vector<8x256xf32>
    %c7_i32_99 = arith.constant 7 : i32
    %294 = arith.subi %c7_i32_99, %c6_i32 : i32
    %295 = arith.index_cast %294 : i32 to index
    %c0_100 = arith.constant 0 : index
    %c0_101 = arith.constant 0 : index
    %296 = vector.load %arg7[%295, %c0_100, %c0_101] : memref<8x8x256xf32, #tpu.memory_space<vmem>>, vector<1x8x256xf32>
    %297 = vector.shape_cast %296 : vector<1x8x256xf32> to vector<8x256xf32>
    %298 = arith.addf %293, %297 : vector<8x256xf32>
    %cst_102 = arith.constant dense<0.000000e+00> : vector<8x256xf32>
    %299 = tpu.matmul %279, %13, %cst_102 {dimension_numbers = #tpu.dot_dimension_numbers<[1], [0], [0], [1], [0, 0, 1, 1], [], []>} : vector<8x64xf32>, vector<64x256xf32>, vector<8x256xf32> -> vector<8x256xf32>
    %300 = arith.addf %298, %299 : vector<8x256xf32>
    %301 = vector.extract_strided_slice %300 {offsets = [0, 0], sizes = [8, 64], strides = [1, 1]} : vector<8x256xf32> to vector<8x64xf32>
    %302 = arith.negf %301 : vector<8x64xf32>
    %303 = math.exp %302 : vector<8x64xf32>
    %cst_103 = arith.constant 1.000000e+00 : f32
    %304 = vector.broadcast %cst_103 : f32 to vector<8x64xf32>
    %305 = arith.addf %304, %303 : vector<8x64xf32>
    %306 = arith.divf %304, %305 : vector<8x64xf32>
    %307 = vector.extract_strided_slice %300 {offsets = [0, 64], sizes = [8, 64], strides = [1, 1]} : vector<8x256xf32> to vector<8x64xf32>
    %308 = arith.negf %307 : vector<8x64xf32>
    %309 = math.exp %308 : vector<8x64xf32>
    %cst_104 = arith.constant 1.000000e+00 : f32
    %310 = vector.broadcast %cst_104 : f32 to vector<8x64xf32>
    %311 = arith.addf %310, %309 : vector<8x64xf32>
    %312 = arith.divf %310, %311 : vector<8x64xf32>
    %313 = vector.extract_strided_slice %300 {offsets = [0, 128], sizes = [8, 64], strides = [1, 1]} : vector<8x256xf32> to vector<8x64xf32>
    %314 = math.tanh %313 : vector<8x64xf32>
    %315 = vector.extract_strided_slice %300 {offsets = [0, 192], sizes = [8, 64], strides = [1, 1]} : vector<8x256xf32> to vector<8x64xf32>
    %316 = arith.negf %315 : vector<8x64xf32>
    %317 = math.exp %316 : vector<8x64xf32>
    %cst_105 = arith.constant 1.000000e+00 : f32
    %318 = vector.broadcast %cst_105 : f32 to vector<8x64xf32>
    %319 = arith.addf %318, %317 : vector<8x64xf32>
    %320 = arith.divf %318, %319 : vector<8x64xf32>
    %321 = arith.mulf %312, %277 : vector<8x64xf32>
    %322 = arith.mulf %306, %314 : vector<8x64xf32>
    %323 = arith.addf %321, %322 : vector<8x64xf32>
    %324 = math.tanh %323 : vector<8x64xf32>
    %325 = arith.mulf %320, %324 : vector<8x64xf32>
    %326 = vector.extract_strided_slice %325 {offsets = [0, 0], sizes = [8, 32], strides = [1, 1]} : vector<8x64xf32> to vector<8x32xf32>
    %327 = arith.index_cast %c6_i32 : i32 to index
    %c0_106 = arith.constant 0 : index
    %c0_107 = arith.constant 0 : index
    %328 = vector.load %arg8[%327, %c0_106, %c0_107] : memref<8x8x32xf32, #tpu.memory_space<vmem>>, vector<1x8x32xf32>
    %329 = vector.shape_cast %328 : vector<1x8x32xf32> to vector<8x32xf32>
    %330 = vector.shape_cast %326 : vector<8x32xf32> to vector<1x8x32xf32>
    tpu.vector_store %arg8[%327, %c0_106, %c0_107], %330 {strides = array<i32>} : memref<8x8x32xf32, #tpu.memory_space<vmem>>, vector<1x8x32xf32>,
    %331 = vector.extract_strided_slice %325 {offsets = [0, 32], sizes = [8, 32], strides = [1, 1]} : vector<8x64xf32> to vector<8x32xf32>
    %c7_i32_108 = arith.constant 7 : i32
    %332 = arith.subi %c7_i32_108, %c6_i32 : i32
    %333 = arith.index_cast %332 : i32 to index
    %c0_109 = arith.constant 0 : index
    %c0_110 = arith.constant 0 : index
    %334 = vector.load %arg9[%333, %c0_109, %c0_110] : memref<8x8x32xf32, #tpu.memory_space<vmem>>, vector<1x8x32xf32>
    %335 = vector.shape_cast %334 : vector<1x8x32xf32> to vector<8x32xf32>
    %336 = vector.shape_cast %331 : vector<8x32xf32> to vector<1x8x32xf32>
    tpu.vector_store %arg9[%333, %c0_109, %c0_110], %336 {strides = array<i32>} : memref<8x8x32xf32, #tpu.memory_space<vmem>>, vector<1x8x32xf32>,
    %c7_i32_111 = arith.constant 7 : i32
    %337 = arith.index_cast %c7_i32_111 : i32 to index
    %c0_112 = arith.constant 0 : index
    %c0_113 = arith.constant 0 : index
    %338 = vector.load %arg6[%337, %c0_112, %c0_113] : memref<8x8x256xf32, #tpu.memory_space<vmem>>, vector<1x8x256xf32>
    %339 = vector.shape_cast %338 : vector<1x8x256xf32> to vector<8x256xf32>
    %c7_i32_114 = arith.constant 7 : i32
    %340 = arith.subi %c7_i32_114, %c7_i32_111 : i32
    %341 = arith.index_cast %340 : i32 to index
    %c0_115 = arith.constant 0 : index
    %c0_116 = arith.constant 0 : index
    %342 = vector.load %arg7[%341, %c0_115, %c0_116] : memref<8x8x256xf32, #tpu.memory_space<vmem>>, vector<1x8x256xf32>
    %343 = vector.shape_cast %342 : vector<1x8x256xf32> to vector<8x256xf32>
    %344 = arith.addf %339, %343 : vector<8x256xf32>
    %cst_117 = arith.constant dense<0.000000e+00> : vector<8x256xf32>
    %345 = tpu.matmul %325, %13, %cst_117 {dimension_numbers = #tpu.dot_dimension_numbers<[1], [0], [0], [1], [0, 0, 1, 1], [], []>} : vector<8x64xf32>, vector<64x256xf32>, vector<8x256xf32> -> vector<8x256xf32>
    %346 = arith.addf %344, %345 : vector<8x256xf32>
    %347 = vector.extract_strided_slice %346 {offsets = [0, 0], sizes = [8, 64], strides = [1, 1]} : vector<8x256xf32> to vector<8x64xf32>
    %348 = arith.negf %347 : vector<8x64xf32>
    %349 = math.exp %348 : vector<8x64xf32>
    %cst_118 = arith.constant 1.000000e+00 : f32
    %350 = vector.broadcast %cst_118 : f32 to vector<8x64xf32>
    %351 = arith.addf %350, %349 : vector<8x64xf32>
    %352 = arith.divf %350, %351 : vector<8x64xf32>
    %353 = vector.extract_strided_slice %346 {offsets = [0, 64], sizes = [8, 64], strides = [1, 1]} : vector<8x256xf32> to vector<8x64xf32>
    %354 = arith.negf %353 : vector<8x64xf32>
    %355 = math.exp %354 : vector<8x64xf32>
    %cst_119 = arith.constant 1.000000e+00 : f32
    %356 = vector.broadcast %cst_119 : f32 to vector<8x64xf32>
    %357 = arith.addf %356, %355 : vector<8x64xf32>
    %358 = arith.divf %356, %357 : vector<8x64xf32>
    %359 = vector.extract_strided_slice %346 {offsets = [0, 128], sizes = [8, 64], strides = [1, 1]} : vector<8x256xf32> to vector<8x64xf32>
    %360 = math.tanh %359 : vector<8x64xf32>
    %361 = vector.extract_strided_slice %346 {offsets = [0, 192], sizes = [8, 64], strides = [1, 1]} : vector<8x256xf32> to vector<8x64xf32>
    %362 = arith.negf %361 : vector<8x64xf32>
    %363 = math.exp %362 : vector<8x64xf32>
    %cst_120 = arith.constant 1.000000e+00 : f32
    %364 = vector.broadcast %cst_120 : f32 to vector<8x64xf32>
    %365 = arith.addf %364, %363 : vector<8x64xf32>
    %366 = arith.divf %364, %365 : vector<8x64xf32>
    %367 = arith.mulf %358, %323 : vector<8x64xf32>
    %368 = arith.mulf %352, %360 : vector<8x64xf32>
    %369 = arith.addf %367, %368 : vector<8x64xf32>
    %370 = math.tanh %369 : vector<8x64xf32>
    %371 = arith.mulf %366, %370 : vector<8x64xf32>
    %372 = vector.extract_strided_slice %371 {offsets = [0, 0], sizes = [8, 32], strides = [1, 1]} : vector<8x64xf32> to vector<8x32xf32>
    %373 = arith.index_cast %c7_i32_111 : i32 to index
    %c0_121 = arith.constant 0 : index
    %c0_122 = arith.constant 0 : index
    %374 = vector.load %arg8[%373, %c0_121, %c0_122] : memref<8x8x32xf32, #tpu.memory_space<vmem>>, vector<1x8x32xf32>
    %375 = vector.shape_cast %374 : vector<1x8x32xf32> to vector<8x32xf32>
    %376 = vector.shape_cast %372 : vector<8x32xf32> to vector<1x8x32xf32>
    tpu.vector_store %arg8[%373, %c0_121, %c0_122], %376 {strides = array<i32>} : memref<8x8x32xf32, #tpu.memory_space<vmem>>, vector<1x8x32xf32>,
    %377 = vector.extract_strided_slice %371 {offsets = [0, 32], sizes = [8, 32], strides = [1, 1]} : vector<8x64xf32> to vector<8x32xf32>
    %c7_i32_123 = arith.constant 7 : i32
    %378 = arith.subi %c7_i32_123, %c7_i32_111 : i32
    %379 = arith.index_cast %378 : i32 to index
    %c0_124 = arith.constant 0 : index
    %c0_125 = arith.constant 0 : index
    %380 = vector.load %arg9[%379, %c0_124, %c0_125] : memref<8x8x32xf32, #tpu.memory_space<vmem>>, vector<1x8x32xf32>
    %381 = vector.shape_cast %380 : vector<1x8x32xf32> to vector<8x32xf32>
    %382 = vector.shape_cast %377 : vector<8x32xf32> to vector<1x8x32xf32>
    tpu.vector_store %arg9[%379, %c0_124, %c0_125], %382 {strides = array<i32>} : memref<8x8x32xf32, #tpu.memory_space<vmem>>, vector<1x8x32xf32>,
    %c8_i32 = arith.constant 8 : i32
    %c0_126 = arith.constant 0 : index
    %c0_127 = arith.constant 0 : index
    %c0_128 = arith.constant 0 : index
    %383 = vector.load %arg8[%c0_126, %c0_127, %c0_128] : memref<8x8x32xf32, #tpu.memory_space<vmem>>, vector<8x8x32xf32>
    %384 = vector.shape_cast %383 : vector<8x8x32xf32> to vector<64x32xf32>
    %c0_129 = arith.constant 0 : index
    %c0_130 = arith.constant 0 : index
    %c0_131 = arith.constant 0 : index
    %385 = vector.load %arg9[%c0_129, %c0_130, %c0_131] : memref<8x8x32xf32, #tpu.memory_space<vmem>>, vector<8x8x32xf32>
    %386 = vector.shape_cast %385 : vector<8x8x32xf32> to vector<64x32xf32>
    %c0_132 = arith.constant 0 : index
    %c0_133 = arith.constant 0 : index
    %387 = vector.load %arg2[%c0_132, %c0_133] : memref<160x128xf32, #tpu.memory_space<vmem>>, vector<32x128xf32>
    %cst_134 = arith.constant dense<0.000000e+00> : vector<64x128xf32>
    %388 = tpu.matmul %384, %387, %cst_134 {dimension_numbers = #tpu.dot_dimension_numbers<[1], [0], [0], [1], [0, 0, 1, 1], [], []>} : vector<64x32xf32>, vector<32x128xf32>, vector<64x128xf32> -> vector<64x128xf32>
    %c32 = arith.constant 32 : index
    %c0_135 = arith.constant 0 : index
    %389 = vector.load %arg2[%c32, %c0_135] : memref<160x128xf32, #tpu.memory_space<vmem>>, vector<32x128xf32>
    %cst_136 = arith.constant dense<0.000000e+00> : vector<64x128xf32>
    %390 = tpu.matmul %386, %389, %cst_136 {dimension_numbers = #tpu.dot_dimension_numbers<[1], [0], [0], [1], [0, 0, 1, 1], [], []>} : vector<64x32xf32>, vector<32x128xf32>, vector<64x128xf32> -> vector<64x128xf32>
    %391 = arith.addf %388, %390 : vector<64x128xf32>
    %c0_137 = arith.constant 0 : index
    %c512 = arith.constant 512 : index
    %392 = vector.load %arg4[%c0_137, %c512] : memref<1x1024xf32, #tpu.memory_space<vmem>>, vector<1x128xf32>
    %393 = vector.broadcast %392 : vector<1x128xf32> to vector<64x128xf32>
    %394 = arith.addf %391, %393 : vector<64x128xf32>
    %395 = vector.shape_cast %394 : vector<64x128xf32> to vector<8x8x128xf32>
    %c0_138 = arith.constant 0 : index
    %c0_139 = arith.constant 0 : index
    %c0_140 = arith.constant 0 : index
    %396 = vector.load %arg10[%c0_138, %c0_139, %c0_140] : memref<8x8x128xf32, #tpu.memory_space<vmem>>, vector<8x8x128xf32>
    tpu.vector_store %arg10[%c0_138, %c0_139, %c0_140], %395 {strides = array<i32>} : memref<8x8x128xf32, #tpu.memory_space<vmem>>, vector<8x8x128xf32>,
    %c128 = arith.constant 128 : index
    %c0_141 = arith.constant 0 : index
    %397 = vector.load %arg2[%c128, %c0_141] : memref<160x128xf32, #tpu.memory_space<vmem>>, vector<32x128xf32>
    %cst_142 = arith.constant 0.000000e+00 : f32
    %398 = vector.broadcast %cst_142 : f32 to vector<8x32xf32>
    %c0_i32_143 = arith.constant 0 : i32
    %399 = arith.index_cast %c0_i32_143 : i32 to index
    %c0_144 = arith.constant 0 : index
    %c0_145 = arith.constant 0 : index
    %400 = vector.load %arg10[%399, %c0_144, %c0_145] : memref<8x8x128xf32, #tpu.memory_space<vmem>>, vector<1x8x128xf32>
    %401 = vector.shape_cast %400 : vector<1x8x128xf32> to vector<8x128xf32>
    %cst_146 = arith.constant dense<0.000000e+00> : vector<8x128xf32>
    %402 = tpu.matmul %398, %397, %cst_146 {dimension_numbers = #tpu.dot_dimension_numbers<[1], [0], [0], [1], [0, 0, 1, 1], [], []>} : vector<8x32xf32>, vector<32x128xf32>, vector<8x128xf32> -> vector<8x128xf32>
    %403 = arith.addf %401, %402 : vector<8x128xf32>
    %404 = vector.extract_strided_slice %403 {offsets = [0, 0], sizes = [8, 32], strides = [1, 1]} : vector<8x128xf32> to vector<8x32xf32>
    %405 = arith.negf %404 : vector<8x32xf32>
    %406 = math.exp %405 : vector<8x32xf32>
    %cst_147 = arith.constant 1.000000e+00 : f32
    %407 = vector.broadcast %cst_147 : f32 to vector<8x32xf32>
    %408 = arith.addf %407, %406 : vector<8x32xf32>
    %409 = arith.divf %407, %408 : vector<8x32xf32>
    %410 = vector.extract_strided_slice %403 {offsets = [0, 32], sizes = [8, 32], strides = [1, 1]} : vector<8x128xf32> to vector<8x32xf32>
    %411 = arith.negf %410 : vector<8x32xf32>
    %412 = math.exp %411 : vector<8x32xf32>
    %cst_148 = arith.constant 1.000000e+00 : f32
    %413 = vector.broadcast %cst_148 : f32 to vector<8x32xf32>
    %414 = arith.addf %413, %412 : vector<8x32xf32>
    %415 = arith.divf %413, %414 : vector<8x32xf32>
    %416 = vector.extract_strided_slice %403 {offsets = [0, 64], sizes = [8, 32], strides = [1, 1]} : vector<8x128xf32> to vector<8x32xf32>
    %417 = math.tanh %416 : vector<8x32xf32>
    %418 = vector.extract_strided_slice %403 {offsets = [0, 96], sizes = [8, 32], strides = [1, 1]} : vector<8x128xf32> to vector<8x32xf32>
    %419 = arith.negf %418 : vector<8x32xf32>
    %420 = math.exp %419 : vector<8x32xf32>
    %cst_149 = arith.constant 1.000000e+00 : f32
    %421 = vector.broadcast %cst_149 : f32 to vector<8x32xf32>
    %422 = arith.addf %421, %420 : vector<8x32xf32>
    %423 = arith.divf %421, %422 : vector<8x32xf32>
    %424 = arith.mulf %415, %398 : vector<8x32xf32>
    %425 = arith.mulf %409, %417 : vector<8x32xf32>
    %426 = arith.addf %424, %425 : vector<8x32xf32>
    %427 = math.tanh %426 : vector<8x32xf32>
    %428 = arith.mulf %423, %427 : vector<8x32xf32>
    %c1_i32_150 = arith.constant 1 : i32
    %429 = arith.index_cast %c1_i32_150 : i32 to index
    %c0_151 = arith.constant 0 : index
    %c0_152 = arith.constant 0 : index
    %430 = vector.load %arg10[%429, %c0_151, %c0_152] : memref<8x8x128xf32, #tpu.memory_space<vmem>>, vector<1x8x128xf32>
    %431 = vector.shape_cast %430 : vector<1x8x128xf32> to vector<8x128xf32>
    %cst_153 = arith.constant dense<0.000000e+00> : vector<8x128xf32>
    %432 = tpu.matmul %428, %397, %cst_153 {dimension_numbers = #tpu.dot_dimension_numbers<[1], [0], [0], [1], [0, 0, 1, 1], [], []>} : vector<8x32xf32>, vector<32x128xf32>, vector<8x128xf32> -> vector<8x128xf32>
    %433 = arith.addf %431, %432 : vector<8x128xf32>
    %434 = vector.extract_strided_slice %433 {offsets = [0, 0], sizes = [8, 32], strides = [1, 1]} : vector<8x128xf32> to vector<8x32xf32>
    %435 = arith.negf %434 : vector<8x32xf32>
    %436 = math.exp %435 : vector<8x32xf32>
    %cst_154 = arith.constant 1.000000e+00 : f32
    %437 = vector.broadcast %cst_154 : f32 to vector<8x32xf32>
    %438 = arith.addf %437, %436 : vector<8x32xf32>
    %439 = arith.divf %437, %438 : vector<8x32xf32>
    %440 = vector.extract_strided_slice %433 {offsets = [0, 32], sizes = [8, 32], strides = [1, 1]} : vector<8x128xf32> to vector<8x32xf32>
    %441 = arith.negf %440 : vector<8x32xf32>
    %442 = math.exp %441 : vector<8x32xf32>
    %cst_155 = arith.constant 1.000000e+00 : f32
    %443 = vector.broadcast %cst_155 : f32 to vector<8x32xf32>
    %444 = arith.addf %443, %442 : vector<8x32xf32>
    %445 = arith.divf %443, %444 : vector<8x32xf32>
    %446 = vector.extract_strided_slice %433 {offsets = [0, 64], sizes = [8, 32], strides = [1, 1]} : vector<8x128xf32> to vector<8x32xf32>
    %447 = math.tanh %446 : vector<8x32xf32>
    %448 = vector.extract_strided_slice %433 {offsets = [0, 96], sizes = [8, 32], strides = [1, 1]} : vector<8x128xf32> to vector<8x32xf32>
    %449 = arith.negf %448 : vector<8x32xf32>
    %450 = math.exp %449 : vector<8x32xf32>
    %cst_156 = arith.constant 1.000000e+00 : f32
    %451 = vector.broadcast %cst_156 : f32 to vector<8x32xf32>
    %452 = arith.addf %451, %450 : vector<8x32xf32>
    %453 = arith.divf %451, %452 : vector<8x32xf32>
    %454 = arith.mulf %445, %426 : vector<8x32xf32>
    %455 = arith.mulf %439, %447 : vector<8x32xf32>
    %456 = arith.addf %454, %455 : vector<8x32xf32>
    %457 = math.tanh %456 : vector<8x32xf32>
    %458 = arith.mulf %453, %457 : vector<8x32xf32>
    %c2_i32_157 = arith.constant 2 : i32
    %459 = arith.index_cast %c2_i32_157 : i32 to index
    %c0_158 = arith.constant 0 : index
    %c0_159 = arith.constant 0 : index
    %460 = vector.load %arg10[%459, %c0_158, %c0_159] : memref<8x8x128xf32, #tpu.memory_space<vmem>>, vector<1x8x128xf32>
    %461 = vector.shape_cast %460 : vector<1x8x128xf32> to vector<8x128xf32>
    %cst_160 = arith.constant dense<0.000000e+00> : vector<8x128xf32>
    %462 = tpu.matmul %458, %397, %cst_160 {dimension_numbers = #tpu.dot_dimension_numbers<[1], [0], [0], [1], [0, 0, 1, 1], [], []>} : vector<8x32xf32>, vector<32x128xf32>, vector<8x128xf32> -> vector<8x128xf32>
    %463 = arith.addf %461, %462 : vector<8x128xf32>
    %464 = vector.extract_strided_slice %463 {offsets = [0, 0], sizes = [8, 32], strides = [1, 1]} : vector<8x128xf32> to vector<8x32xf32>
    %465 = arith.negf %464 : vector<8x32xf32>
    %466 = math.exp %465 : vector<8x32xf32>
    %cst_161 = arith.constant 1.000000e+00 : f32
    %467 = vector.broadcast %cst_161 : f32 to vector<8x32xf32>
    %468 = arith.addf %467, %466 : vector<8x32xf32>
    %469 = arith.divf %467, %468 : vector<8x32xf32>
    %470 = vector.extract_strided_slice %463 {offsets = [0, 32], sizes = [8, 32], strides = [1, 1]} : vector<8x128xf32> to vector<8x32xf32>
    %471 = arith.negf %470 : vector<8x32xf32>
    %472 = math.exp %471 : vector<8x32xf32>
    %cst_162 = arith.constant 1.000000e+00 : f32
    %473 = vector.broadcast %cst_162 : f32 to vector<8x32xf32>
    %474 = arith.addf %473, %472 : vector<8x32xf32>
    %475 = arith.divf %473, %474 : vector<8x32xf32>
    %476 = vector.extract_strided_slice %463 {offsets = [0, 64], sizes = [8, 32], strides = [1, 1]} : vector<8x128xf32> to vector<8x32xf32>
    %477 = math.tanh %476 : vector<8x32xf32>
    %478 = vector.extract_strided_slice %463 {offsets = [0, 96], sizes = [8, 32], strides = [1, 1]} : vector<8x128xf32> to vector<8x32xf32>
    %479 = arith.negf %478 : vector<8x32xf32>
    %480 = math.exp %479 : vector<8x32xf32>
    %cst_163 = arith.constant 1.000000e+00 : f32
    %481 = vector.broadcast %cst_163 : f32 to vector<8x32xf32>
    %482 = arith.addf %481, %480 : vector<8x32xf32>
    %483 = arith.divf %481, %482 : vector<8x32xf32>
    %484 = arith.mulf %475, %456 : vector<8x32xf32>
    %485 = arith.mulf %469, %477 : vector<8x32xf32>
    %486 = arith.addf %484, %485 : vector<8x32xf32>
    %487 = math.tanh %486 : vector<8x32xf32>
    %488 = arith.mulf %483, %487 : vector<8x32xf32>
    %c3_i32_164 = arith.constant 3 : i32
    %489 = arith.index_cast %c3_i32_164 : i32 to index
    %c0_165 = arith.constant 0 : index
    %c0_166 = arith.constant 0 : index
    %490 = vector.load %arg10[%489, %c0_165, %c0_166] : memref<8x8x128xf32, #tpu.memory_space<vmem>>, vector<1x8x128xf32>
    %491 = vector.shape_cast %490 : vector<1x8x128xf32> to vector<8x128xf32>
    %cst_167 = arith.constant dense<0.000000e+00> : vector<8x128xf32>
    %492 = tpu.matmul %488, %397, %cst_167 {dimension_numbers = #tpu.dot_dimension_numbers<[1], [0], [0], [1], [0, 0, 1, 1], [], []>} : vector<8x32xf32>, vector<32x128xf32>, vector<8x128xf32> -> vector<8x128xf32>
    %493 = arith.addf %491, %492 : vector<8x128xf32>
    %494 = vector.extract_strided_slice %493 {offsets = [0, 0], sizes = [8, 32], strides = [1, 1]} : vector<8x128xf32> to vector<8x32xf32>
    %495 = arith.negf %494 : vector<8x32xf32>
    %496 = math.exp %495 : vector<8x32xf32>
    %cst_168 = arith.constant 1.000000e+00 : f32
    %497 = vector.broadcast %cst_168 : f32 to vector<8x32xf32>
    %498 = arith.addf %497, %496 : vector<8x32xf32>
    %499 = arith.divf %497, %498 : vector<8x32xf32>
    %500 = vector.extract_strided_slice %493 {offsets = [0, 32], sizes = [8, 32], strides = [1, 1]} : vector<8x128xf32> to vector<8x32xf32>
    %501 = arith.negf %500 : vector<8x32xf32>
    %502 = math.exp %501 : vector<8x32xf32>
    %cst_169 = arith.constant 1.000000e+00 : f32
    %503 = vector.broadcast %cst_169 : f32 to vector<8x32xf32>
    %504 = arith.addf %503, %502 : vector<8x32xf32>
    %505 = arith.divf %503, %504 : vector<8x32xf32>
    %506 = vector.extract_strided_slice %493 {offsets = [0, 64], sizes = [8, 32], strides = [1, 1]} : vector<8x128xf32> to vector<8x32xf32>
    %507 = math.tanh %506 : vector<8x32xf32>
    %508 = vector.extract_strided_slice %493 {offsets = [0, 96], sizes = [8, 32], strides = [1, 1]} : vector<8x128xf32> to vector<8x32xf32>
    %509 = arith.negf %508 : vector<8x32xf32>
    %510 = math.exp %509 : vector<8x32xf32>
    %cst_170 = arith.constant 1.000000e+00 : f32
    %511 = vector.broadcast %cst_170 : f32 to vector<8x32xf32>
    %512 = arith.addf %511, %510 : vector<8x32xf32>
    %513 = arith.divf %511, %512 : vector<8x32xf32>
    %514 = arith.mulf %505, %486 : vector<8x32xf32>
    %515 = arith.mulf %499, %507 : vector<8x32xf32>
    %516 = arith.addf %514, %515 : vector<8x32xf32>
    %517 = math.tanh %516 : vector<8x32xf32>
    %518 = arith.mulf %513, %517 : vector<8x32xf32>
    %c4_i32_171 = arith.constant 4 : i32
    %519 = arith.index_cast %c4_i32_171 : i32 to index
    %c0_172 = arith.constant 0 : index
    %c0_173 = arith.constant 0 : index
    %520 = vector.load %arg10[%519, %c0_172, %c0_173] : memref<8x8x128xf32, #tpu.memory_space<vmem>>, vector<1x8x128xf32>
    %521 = vector.shape_cast %520 : vector<1x8x128xf32> to vector<8x128xf32>
    %cst_174 = arith.constant dense<0.000000e+00> : vector<8x128xf32>
    %522 = tpu.matmul %518, %397, %cst_174 {dimension_numbers = #tpu.dot_dimension_numbers<[1], [0], [0], [1], [0, 0, 1, 1], [], []>} : vector<8x32xf32>, vector<32x128xf32>, vector<8x128xf32> -> vector<8x128xf32>
    %523 = arith.addf %521, %522 : vector<8x128xf32>
    %524 = vector.extract_strided_slice %523 {offsets = [0, 0], sizes = [8, 32], strides = [1, 1]} : vector<8x128xf32> to vector<8x32xf32>
    %525 = arith.negf %524 : vector<8x32xf32>
    %526 = math.exp %525 : vector<8x32xf32>
    %cst_175 = arith.constant 1.000000e+00 : f32
    %527 = vector.broadcast %cst_175 : f32 to vector<8x32xf32>
    %528 = arith.addf %527, %526 : vector<8x32xf32>
    %529 = arith.divf %527, %528 : vector<8x32xf32>
    %530 = vector.extract_strided_slice %523 {offsets = [0, 32], sizes = [8, 32], strides = [1, 1]} : vector<8x128xf32> to vector<8x32xf32>
    %531 = arith.negf %530 : vector<8x32xf32>
    %532 = math.exp %531 : vector<8x32xf32>
    %cst_176 = arith.constant 1.000000e+00 : f32
    %533 = vector.broadcast %cst_176 : f32 to vector<8x32xf32>
    %534 = arith.addf %533, %532 : vector<8x32xf32>
    %535 = arith.divf %533, %534 : vector<8x32xf32>
    %536 = vector.extract_strided_slice %523 {offsets = [0, 64], sizes = [8, 32], strides = [1, 1]} : vector<8x128xf32> to vector<8x32xf32>
    %537 = math.tanh %536 : vector<8x32xf32>
    %538 = vector.extract_strided_slice %523 {offsets = [0, 96], sizes = [8, 32], strides = [1, 1]} : vector<8x128xf32> to vector<8x32xf32>
    %539 = arith.negf %538 : vector<8x32xf32>
    %540 = math.exp %539 : vector<8x32xf32>
    %cst_177 = arith.constant 1.000000e+00 : f32
    %541 = vector.broadcast %cst_177 : f32 to vector<8x32xf32>
    %542 = arith.addf %541, %540 : vector<8x32xf32>
    %543 = arith.divf %541, %542 : vector<8x32xf32>
    %544 = arith.mulf %535, %516 : vector<8x32xf32>
    %545 = arith.mulf %529, %537 : vector<8x32xf32>
    %546 = arith.addf %544, %545 : vector<8x32xf32>
    %547 = math.tanh %546 : vector<8x32xf32>
    %548 = arith.mulf %543, %547 : vector<8x32xf32>
    %c5_i32_178 = arith.constant 5 : i32
    %549 = arith.index_cast %c5_i32_178 : i32 to index
    %c0_179 = arith.constant 0 : index
    %c0_180 = arith.constant 0 : index
    %550 = vector.load %arg10[%549, %c0_179, %c0_180] : memref<8x8x128xf32, #tpu.memory_space<vmem>>, vector<1x8x128xf32>
    %551 = vector.shape_cast %550 : vector<1x8x128xf32> to vector<8x128xf32>
    %cst_181 = arith.constant dense<0.000000e+00> : vector<8x128xf32>
    %552 = tpu.matmul %548, %397, %cst_181 {dimension_numbers = #tpu.dot_dimension_numbers<[1], [0], [0], [1], [0, 0, 1, 1], [], []>} : vector<8x32xf32>, vector<32x128xf32>, vector<8x128xf32> -> vector<8x128xf32>
    %553 = arith.addf %551, %552 : vector<8x128xf32>
    %554 = vector.extract_strided_slice %553 {offsets = [0, 0], sizes = [8, 32], strides = [1, 1]} : vector<8x128xf32> to vector<8x32xf32>
    %555 = arith.negf %554 : vector<8x32xf32>
    %556 = math.exp %555 : vector<8x32xf32>
    %cst_182 = arith.constant 1.000000e+00 : f32
    %557 = vector.broadcast %cst_182 : f32 to vector<8x32xf32>
    %558 = arith.addf %557, %556 : vector<8x32xf32>
    %559 = arith.divf %557, %558 : vector<8x32xf32>
    %560 = vector.extract_strided_slice %553 {offsets = [0, 32], sizes = [8, 32], strides = [1, 1]} : vector<8x128xf32> to vector<8x32xf32>
    %561 = arith.negf %560 : vector<8x32xf32>
    %562 = math.exp %561 : vector<8x32xf32>
    %cst_183 = arith.constant 1.000000e+00 : f32
    %563 = vector.broadcast %cst_183 : f32 to vector<8x32xf32>
    %564 = arith.addf %563, %562 : vector<8x32xf32>
    %565 = arith.divf %563, %564 : vector<8x32xf32>
    %566 = vector.extract_strided_slice %553 {offsets = [0, 64], sizes = [8, 32], strides = [1, 1]} : vector<8x128xf32> to vector<8x32xf32>
    %567 = math.tanh %566 : vector<8x32xf32>
    %568 = vector.extract_strided_slice %553 {offsets = [0, 96], sizes = [8, 32], strides = [1, 1]} : vector<8x128xf32> to vector<8x32xf32>
    %569 = arith.negf %568 : vector<8x32xf32>
    %570 = math.exp %569 : vector<8x32xf32>
    %cst_184 = arith.constant 1.000000e+00 : f32
    %571 = vector.broadcast %cst_184 : f32 to vector<8x32xf32>
    %572 = arith.addf %571, %570 : vector<8x32xf32>
    %573 = arith.divf %571, %572 : vector<8x32xf32>
    %574 = arith.mulf %565, %546 : vector<8x32xf32>
    %575 = arith.mulf %559, %567 : vector<8x32xf32>
    %576 = arith.addf %574, %575 : vector<8x32xf32>
    %577 = math.tanh %576 : vector<8x32xf32>
    %578 = arith.mulf %573, %577 : vector<8x32xf32>
    %c6_i32_185 = arith.constant 6 : i32
    %579 = arith.index_cast %c6_i32_185 : i32 to index
    %c0_186 = arith.constant 0 : index
    %c0_187 = arith.constant 0 : index
    %580 = vector.load %arg10[%579, %c0_186, %c0_187] : memref<8x8x128xf32, #tpu.memory_space<vmem>>, vector<1x8x128xf32>
    %581 = vector.shape_cast %580 : vector<1x8x128xf32> to vector<8x128xf32>
    %cst_188 = arith.constant dense<0.000000e+00> : vector<8x128xf32>
    %582 = tpu.matmul %578, %397, %cst_188 {dimension_numbers = #tpu.dot_dimension_numbers<[1], [0], [0], [1], [0, 0, 1, 1], [], []>} : vector<8x32xf32>, vector<32x128xf32>, vector<8x128xf32> -> vector<8x128xf32>
    %583 = arith.addf %581, %582 : vector<8x128xf32>
    %584 = vector.extract_strided_slice %583 {offsets = [0, 0], sizes = [8, 32], strides = [1, 1]} : vector<8x128xf32> to vector<8x32xf32>
    %585 = arith.negf %584 : vector<8x32xf32>
    %586 = math.exp %585 : vector<8x32xf32>
    %cst_189 = arith.constant 1.000000e+00 : f32
    %587 = vector.broadcast %cst_189 : f32 to vector<8x32xf32>
    %588 = arith.addf %587, %586 : vector<8x32xf32>
    %589 = arith.divf %587, %588 : vector<8x32xf32>
    %590 = vector.extract_strided_slice %583 {offsets = [0, 32], sizes = [8, 32], strides = [1, 1]} : vector<8x128xf32> to vector<8x32xf32>
    %591 = arith.negf %590 : vector<8x32xf32>
    %592 = math.exp %591 : vector<8x32xf32>
    %cst_190 = arith.constant 1.000000e+00 : f32
    %593 = vector.broadcast %cst_190 : f32 to vector<8x32xf32>
    %594 = arith.addf %593, %592 : vector<8x32xf32>
    %595 = arith.divf %593, %594 : vector<8x32xf32>
    %596 = vector.extract_strided_slice %583 {offsets = [0, 64], sizes = [8, 32], strides = [1, 1]} : vector<8x128xf32> to vector<8x32xf32>
    %597 = math.tanh %596 : vector<8x32xf32>
    %598 = vector.extract_strided_slice %583 {offsets = [0, 96], sizes = [8, 32], strides = [1, 1]} : vector<8x128xf32> to vector<8x32xf32>
    %599 = arith.negf %598 : vector<8x32xf32>
    %600 = math.exp %599 : vector<8x32xf32>
    %cst_191 = arith.constant 1.000000e+00 : f32
    %601 = vector.broadcast %cst_191 : f32 to vector<8x32xf32>
    %602 = arith.addf %601, %600 : vector<8x32xf32>
    %603 = arith.divf %601, %602 : vector<8x32xf32>
    %604 = arith.mulf %595, %576 : vector<8x32xf32>
    %605 = arith.mulf %589, %597 : vector<8x32xf32>
    %606 = arith.addf %604, %605 : vector<8x32xf32>
    %607 = math.tanh %606 : vector<8x32xf32>
    %608 = arith.mulf %603, %607 : vector<8x32xf32>
    %c7_i32_192 = arith.constant 7 : i32
    %609 = arith.index_cast %c7_i32_192 : i32 to index
    %c0_193 = arith.constant 0 : index
    %c0_194 = arith.constant 0 : index
    %610 = vector.load %arg10[%609, %c0_193, %c0_194] : memref<8x8x128xf32, #tpu.memory_space<vmem>>, vector<1x8x128xf32>
    %611 = vector.shape_cast %610 : vector<1x8x128xf32> to vector<8x128xf32>
    %cst_195 = arith.constant dense<0.000000e+00> : vector<8x128xf32>
    %612 = tpu.matmul %608, %397, %cst_195 {dimension_numbers = #tpu.dot_dimension_numbers<[1], [0], [0], [1], [0, 0, 1, 1], [], []>} : vector<8x32xf32>, vector<32x128xf32>, vector<8x128xf32> -> vector<8x128xf32>
    %613 = arith.addf %611, %612 : vector<8x128xf32>
    %614 = vector.extract_strided_slice %613 {offsets = [0, 0], sizes = [8, 32], strides = [1, 1]} : vector<8x128xf32> to vector<8x32xf32>
    %615 = arith.negf %614 : vector<8x32xf32>
    %616 = math.exp %615 : vector<8x32xf32>
    %cst_196 = arith.constant 1.000000e+00 : f32
    %617 = vector.broadcast %cst_196 : f32 to vector<8x32xf32>
    %618 = arith.addf %617, %616 : vector<8x32xf32>
    %619 = arith.divf %617, %618 : vector<8x32xf32>
    %620 = vector.extract_strided_slice %613 {offsets = [0, 32], sizes = [8, 32], strides = [1, 1]} : vector<8x128xf32> to vector<8x32xf32>
    %621 = arith.negf %620 : vector<8x32xf32>
    %622 = math.exp %621 : vector<8x32xf32>
    %cst_197 = arith.constant 1.000000e+00 : f32
    %623 = vector.broadcast %cst_197 : f32 to vector<8x32xf32>
    %624 = arith.addf %623, %622 : vector<8x32xf32>
    %625 = arith.divf %623, %624 : vector<8x32xf32>
    %626 = vector.extract_strided_slice %613 {offsets = [0, 64], sizes = [8, 32], strides = [1, 1]} : vector<8x128xf32> to vector<8x32xf32>
    %627 = math.tanh %626 : vector<8x32xf32>
    %628 = vector.extract_strided_slice %613 {offsets = [0, 96], sizes = [8, 32], strides = [1, 1]} : vector<8x128xf32> to vector<8x32xf32>
    %629 = arith.negf %628 : vector<8x32xf32>
    %630 = math.exp %629 : vector<8x32xf32>
    %cst_198 = arith.constant 1.000000e+00 : f32
    %631 = vector.broadcast %cst_198 : f32 to vector<8x32xf32>
    %632 = arith.addf %631, %630 : vector<8x32xf32>
    %633 = arith.divf %631, %632 : vector<8x32xf32>
    %634 = arith.mulf %625, %606 : vector<8x32xf32>
    %635 = arith.mulf %619, %627 : vector<8x32xf32>
    %636 = arith.addf %634, %635 : vector<8x32xf32>
    %637 = math.tanh %636 : vector<8x32xf32>
    %638 = arith.mulf %633, %637 : vector<8x32xf32>
    %c8_i32_199 = arith.constant 8 : i32
    %c7 = arith.constant 7 : index
    %c0_200 = arith.constant 0 : index
    %c0_201 = arith.constant 0 : index
    %639 = vector.load %arg8[%c7, %c0_200, %c0_201] : memref<8x8x32xf32, #tpu.memory_space<vmem>>, vector<1x8x32xf32>
    %640 = vector.shape_cast %639 : vector<1x8x32xf32> to vector<8x32xf32>
    %c64_202 = arith.constant 64 : index
    %c0_203 = arith.constant 0 : index
    %641 = vector.load %arg2[%c64_202, %c0_203] : memref<160x128xf32, #tpu.memory_space<vmem>>, vector<32x128xf32>
    %cst_204 = arith.constant dense<0.000000e+00> : vector<8x128xf32>
    %642 = tpu.matmul %640, %641, %cst_204 {dimension_numbers = #tpu.dot_dimension_numbers<[1], [0], [0], [1], [0, 0, 1, 1], [], []>} : vector<8x32xf32>, vector<32x128xf32>, vector<8x128xf32> -> vector<8x128xf32>
    %c7_205 = arith.constant 7 : index
    %c0_206 = arith.constant 0 : index
    %c0_207 = arith.constant 0 : index
    %643 = vector.load %arg9[%c7_205, %c0_206, %c0_207] : memref<8x8x32xf32, #tpu.memory_space<vmem>>, vector<1x8x32xf32>
    %644 = vector.shape_cast %643 : vector<1x8x32xf32> to vector<8x32xf32>
    %c96 = arith.constant 96 : index
    %c0_208 = arith.constant 0 : index
    %645 = vector.load %arg2[%c96, %c0_208] : memref<160x128xf32, #tpu.memory_space<vmem>>, vector<32x128xf32>
    %cst_209 = arith.constant dense<0.000000e+00> : vector<8x128xf32>
    %646 = tpu.matmul %644, %645, %cst_209 {dimension_numbers = #tpu.dot_dimension_numbers<[1], [0], [0], [1], [0, 0, 1, 1], [], []>} : vector<8x32xf32>, vector<32x128xf32>, vector<8x128xf32> -> vector<8x128xf32>
    %647 = arith.addf %642, %646 : vector<8x128xf32>
    %c0_210 = arith.constant 0 : index
    %c640 = arith.constant 640 : index
    %648 = vector.load %arg4[%c0_210, %c640] : memref<1x1024xf32, #tpu.memory_space<vmem>>, vector<1x128xf32>
    %649 = vector.broadcast %648 : vector<1x128xf32> to vector<8x128xf32>
    %650 = arith.addf %647, %649 : vector<8x128xf32>
    %651 = vector.extract_strided_slice %650 {offsets = [0, 0], sizes = [8, 32], strides = [1, 1]} : vector<8x128xf32> to vector<8x32xf32>
    %652 = arith.negf %651 : vector<8x32xf32>
    %653 = math.exp %652 : vector<8x32xf32>
    %cst_211 = arith.constant 1.000000e+00 : f32
    %654 = vector.broadcast %cst_211 : f32 to vector<8x32xf32>
    %655 = arith.addf %654, %653 : vector<8x32xf32>
    %656 = arith.divf %654, %655 : vector<8x32xf32>
    %657 = vector.extract_strided_slice %650 {offsets = [0, 64], sizes = [8, 32], strides = [1, 1]} : vector<8x128xf32> to vector<8x32xf32>
    %658 = math.tanh %657 : vector<8x32xf32>
    %659 = vector.extract_strided_slice %650 {offsets = [0, 96], sizes = [8, 32], strides = [1, 1]} : vector<8x128xf32> to vector<8x32xf32>
    %660 = arith.negf %659 : vector<8x32xf32>
    %661 = math.exp %660 : vector<8x32xf32>
    %cst_212 = arith.constant 1.000000e+00 : f32
    %662 = vector.broadcast %cst_212 : f32 to vector<8x32xf32>
    %663 = arith.addf %662, %661 : vector<8x32xf32>
    %664 = arith.divf %662, %663 : vector<8x32xf32>
    %665 = arith.mulf %656, %658 : vector<8x32xf32>
    %666 = math.tanh %665 : vector<8x32xf32>
    %667 = arith.mulf %664, %666 : vector<8x32xf32>
    %cst_213 = arith.constant 0.000000e+00 : f32
    %668 = vector.broadcast %cst_213 : f32 to vector<8x32xf32>
    %669 = arith.maximumf %638, %668 : vector<8x32xf32>
    %cst_214 = arith.constant 0.000000e+00 : f32
    %670 = vector.broadcast %cst_214 : f32 to vector<8x32xf32>
    %671 = arith.maximumf %667, %670 : vector<8x32xf32>
    %c0_215 = arith.constant 0 : index
    %c0_216 = arith.constant 0 : index
    %672 = vector.load %arg3[%c0_215, %c0_216] : memref<192x128xf32, #tpu.memory_space<vmem>>, vector<32x128xf32>
    %cst_217 = arith.constant dense<0.000000e+00> : vector<8x128xf32>
    %673 = tpu.matmul %669, %672, %cst_217 {dimension_numbers = #tpu.dot_dimension_numbers<[1], [0], [0], [1], [0, 0, 1, 1], [], []>} : vector<8x32xf32>, vector<32x128xf32>, vector<8x128xf32> -> vector<8x128xf32>
    %c32_218 = arith.constant 32 : index
    %c0_219 = arith.constant 0 : index
    %674 = vector.load %arg3[%c32_218, %c0_219] : memref<192x128xf32, #tpu.memory_space<vmem>>, vector<32x128xf32>
    %cst_220 = arith.constant dense<0.000000e+00> : vector<8x128xf32>
    %675 = tpu.matmul %671, %674, %cst_220 {dimension_numbers = #tpu.dot_dimension_numbers<[1], [0], [0], [1], [0, 0, 1, 1], [], []>} : vector<8x32xf32>, vector<32x128xf32>, vector<8x128xf32> -> vector<8x128xf32>
    %676 = arith.addf %673, %675 : vector<8x128xf32>
    %c0_221 = arith.constant 0 : index
    %c768 = arith.constant 768 : index
    %677 = vector.load %arg4[%c0_221, %c768] : memref<1x1024xf32, #tpu.memory_space<vmem>>, vector<1x128xf32>
    %678 = vector.broadcast %677 : vector<1x128xf32> to vector<8x128xf32>
    %679 = arith.addf %676, %678 : vector<8x128xf32>
    %cst_222 = arith.constant 0.000000e+00 : f32
    %680 = vector.broadcast %cst_222 : f32 to vector<8x128xf32>
    %681 = arith.maximumf %679, %680 : vector<8x128xf32>
    %c64_223 = arith.constant 64 : index
    %c0_224 = arith.constant 0 : index
    %682 = vector.load %arg3[%c64_223, %c0_224] : memref<192x128xf32, #tpu.memory_space<vmem>>, vector<128x128xf32>
    %cst_225 = arith.constant dense<0.000000e+00> : vector<8x128xf32>
    %683 = tpu.matmul %681, %682, %cst_225 {dimension_numbers = #tpu.dot_dimension_numbers<[1], [0], [0], [1], [0, 0, 1, 1], [], []>} : vector<8x128xf32>, vector<128x128xf32>, vector<8x128xf32> -> vector<8x128xf32>
    %684 = vector.extract_strided_slice %683 {offsets = [0, 0], sizes = [8, 1], strides = [1, 1]} : vector<8x128xf32> to vector<8x1xf32>
    %c0_226 = arith.constant 0 : index
    %c896 = arith.constant 896 : index
    %685 = vector.load %arg4[%c0_226, %c896] : memref<1x1024xf32, #tpu.memory_space<vmem>>, vector<1x1xf32>
    %686 = vector.broadcast %685 : vector<1x1xf32> to vector<8x1xf32>
    %687 = arith.addf %684, %686 : vector<8x1xf32>
    %c0_227 = arith.constant 0 : index
    %c0_228 = arith.constant 0 : index
    %688 = vector.load %arg5[%c0_227, %c0_228] : memref<8x1xf32, #tpu.memory_space<vmem>>, vector<8x1xf32>
    tpu.vector_store %arg5[%c0_227, %c0_228], %687 {strides = array<i32>} : memref<8x1xf32, #tpu.memory_space<vmem>>, vector<8x1xf32>,
    return
  }
}

</mosaic_0001>

<bundles_post_ra>
// kernel: bilstm_forward.1
= control target key start
LH: loop header
LB: loop body
LE: loop exit
PB: predicated region body
PF: predicated region fallthrough
CT: control target
= control target key end

     0   :  { %v3727_v2 = vmov 0.0   ;;  %vm54_vm0 = vcmask 64512   ;;  %v34_v37 = vlaneseq  ;;  %s3728_s24 = smov 64   ;;  %vm463_vm1 = vcmask 261120   ;;  %s3729_s25 = smov 32   ;;  %s4379_s1 = inlined_call_operand.vmem [shape: f32[72,512], index: 1, kind: input, shape index: {}]   ;;  %s4380_s0 = inlined_call_operand.vmem [shape: f32[8,8,8], index: 0, kind: input, shape index: {}]   ;;  %s4381_s4 = inlined_call_operand.vmem [shape: f32[1,1024], index: 4, kind: input, shape index: {}]   ;;  %s4382_s2 = inlined_call_operand.vmem [shape: f32[160,128], index: 2, kind: input, shape index: {}]   ;;  %s4383_s3 = inlined_call_operand.vmem [shape: f32[192,128], index: 3, kind: input, shape index: {}]   ;;  %s4384_s5 = inlined_call_operand.vmem [shape: f32[8,1], index: 5, kind: output, shape index: {}]  }
   0x1   :  { %v29_v0 = vld [vmem:[%s4379_s1 + $0x108] sm:$0xff]  ;;  %v28_v1 = vld [vmem:[%s4379_s1 + $0x100] sm:$0xff]  ;;  %143 = vmatprep.mubr.f32.mxu0 %v3727_v2  ;;  %173 = vmatprep.mubr.f32.mxu1 %v3727_v2  ;;  %v31_v4 = vld [vmem:[%s4379_s1 + $0x118] sm:$0xff]  ;;  %vm360_vm2 = vcmask 523264   ;;  %vm3731_vm3 = vmmov 0   ;;  %s3732_s18 = smov 96  }
   0x2   :  { %v20_v3 = vld [vmem:[%s4380_s0] sm:$0xff]  ;;  %79 = vmatprep.subr.mxu0 %v29_v0  ;;  %v30_v5 = vld [vmem:[%s4379_s1 + $0x110] sm:$0xff]  ;;  %3479 = vmatprep.subr.mxu1 %v29_v0  ;;  %v338_v6 = vld [vmem:[%s4379_s1 + $0x8] sm:$0xff]  ;;  %v35_v38 = vshrl.u32 %v34_v37, 7  ;;  %vm2846_vm4 = vcmask 7168  }
   0x3   :  { %80 = vmatpush1.msra.mxu0 %v28_v1  ;;  %3480 = vmatpush1.msra.mxu1 %v28_v1  ;;  %v340_v7 = vld [vmem:[%s4379_s1 + $0x28] sm:$0xff]  ;;  %v22_v11 = vld [vmem:[%s4380_s0 + $0x10] sm:$0xff]  ;;  %v23_v13 = vld [vmem:[%s4380_s0 + $0x18] sm:$0xff] }
   0x4   :  { %2852 = vmatmul.mubr.msk.f32.vlgmr.msra.gmra.mrb[0].mxu0 %vm54_vm0, %v20_v3  ;;  %192 = vmatprep.subr.mxu0 %v31_v4  ;;  %v21_v8 = vld [vmem:[%s4380_s0 + $0x8] sm:$0xff]  ;;  %v3791_v9 = vpack.c.bf16 %v340_v7, %v338_v6  ;;  %v26_v12 = vld [vmem:[%s4380_s0 + $0x30] sm:$0xff]  ;;  %v27_v14 = vld [vmem:[%s4380_s0 + $0x38] sm:$0xff]  ;;  %v36_v39 = vsub.s32 0, %v35_v38  ;;  %v44_v40 = vsub.s32 2, %v35_v38  ;;  %v40_v47 = vsub.s32 1, %v35_v38 }
   0x5   :  { %193 = vmatpush1.msra.mxu0 %v30_v5  ;;  %149 = vmatprep.mubr.f32.mxu0 %v3727_v2  ;;  %v25_v10 = vld [vmem:[%s4380_s0 + $0x28] sm:$0xff]  ;;  %v24_v15 = vld [vmem:[%s4380_s0 + $0x20] sm:$0xff]  ;;  %v48_v48 = vsub.s32 3, %v35_v38 }
   0x6   :  { %3240 = vmatprep.subr.bf16.mxu0 %v3791_v9  ;;  %2857 = vmatmul.mubr.msk.f32.vlgmr.msra.gmra.mrb[0].mxu1 %vm54_vm0, %v25_v10  ;;  %v337_v16 = vld [vmem:[%s4379_s1] sm:$0xff]  ;;  %v342_v18 = vld [vmem:[%s4379_s1 + $0x48] sm:$0xff] }
   0x7   :  { %179 = vmatprep.mubr.f32.mxu1 %v3727_v2  ;;  %v339_v17 = vld [vmem:[%s4379_s1 + $0x20] sm:$0xff]  ;;  %v344_v19 = vld [vmem:[%s4379_s1 + $0x68] sm:$0xff] }
   0x8   :  { %2853 = vmatmul.mubr.msk.f32.gmra.mrb[2].mxu0 %vm54_vm0, %v21_v8  ;;  %v3837_v20 = vpack.c.bf16 %v339_v17, %v337_v16  ;;  %v3839_v21 = vpack.c.bf16 %v344_v19, %v342_v18  ;;  %v341_v22 = vld [vmem:[%s4379_s1 + $0x40] sm:$0xff]  ;;  %v346_v24 = vld [vmem:[%s4379_s1 + $0x88] sm:$0xff] }
   0x9   :  { %155 = vmatprep.mubr.f32.mxu0 %v3727_v2  ;;  %v343_v23 = vld [vmem:[%s4379_s1 + $0x60] sm:$0xff]  ;;  %v348_v25 = vld [vmem:[%s4379_s1 + $0xa8] sm:$0xff] }
   0xa   :  { %2858 = vmatmul.mubr.msk.f32.gmra.mrb[2].mxu1 %vm54_vm0, %v26_v12  ;;  %v3856_v26 = vpack.c.bf16 %v343_v23, %v341_v22  ;;  %v3859_v27 = vpack.c.bf16 %v348_v25, %v346_v24  ;;  %v345_v28 = vld [vmem:[%s4379_s1 + $0x80] sm:$0xff]  ;;  %v350_v30 = vld [vmem:[%s4379_s1 + $0xc8] sm:$0xff] }
   0xb   :  { %185 = vmatprep.mubr.f32.mxu1 %v3727_v2  ;;  %v347_v29 = vld [vmem:[%s4379_s1 + $0xa0] sm:$0xff]  ;;  %v352_v31 = vld [vmem:[%s4379_s1 + $0xe8] sm:$0xff] }
   0xc   :  { %2854 = vmatmul.mubr.msk.f32.gmra.mrb[4].mxu0 %vm54_vm0, %v22_v11  ;;  %v3876_v32 = vpack.c.bf16 %v347_v29, %v345_v28  ;;  %v3879_v33 = vpack.c.bf16 %v352_v31, %v350_v30  ;;  %v349_v34 = vld [vmem:[%s4379_s1 + $0xc0] sm:$0xff] }
   0xd   :  { %161 = vmatprep.mubr.f32.mxu0 %v3727_v2  ;;  %v351_v35 = vld [vmem:[%s4379_s1 + $0xe0] sm:$0xff] }
   0xe   :  { %2859 = vmatmul.mubr.msk.f32.gmra.mrb[4].mxu1 %vm54_vm0, %v27_v14  ;;  %v3890_v36 = vpack.c.bf16 %v351_v35, %v349_v34  ;;  %v32_v41 = vld [vmem:[%s4381_s4] sm:$0xf] }
   0xf   :  { %v37_v42 = vrot.slane %v32_v41, %v36_v39  ;;  %v45_v43 = vrot.slane %v32_v41, %v44_v40  ;;  %v41_v51 = vrot.slane %v32_v41, %v40_v47  ;;  %v49_v52 = vrot.slane %v32_v41, %v48_v48 }
  0x10   :  { %2855 = vmatmul.mubr.msk.f32.gmra.mrb[6].mxu0 %vm54_vm0, %v23_v13 }
  0x11   :  { %167 = vmatprep.mubr.f32.mxu0 %v3727_v2  ;;  %v3918_v44 = vadd.f32 %v45_v43, %v37_v42  ;;  %v3921_v53 = vadd.f32 %v49_v52, %v41_v51 }
  0x14   :  { %2856 = vmatmul.mubr.msk.f32.gmra.mrb[8].mxu0 %vm54_vm0, %v24_v15 }
  0x15   :  { %256 = vmatprep.mubr.f32.mxu0 %v3727_v2 }
  0x18   :  { %2860 = vmatmul.mubr.msk.f32.vlgmr.msra.gmra.mrb[10].mxu0 %vm54_vm0, %v20_v3 }
  0x19   :  { %3242 = vmatpush1.bf16.msra.mxu0 %v3837_v20  ;;  %262 = vmatprep.mubr.f32.mxu0 %v3727_v2 }
  0x1a   :  { %3244 = vmatprep.subr.bf16.mxu0 %v3839_v21 }
  0x1c   :  { %2861 = vmatmul.mubr.msk.f32.gmra.mrb[12].mxu0 %vm54_vm0, %v21_v8 }
  0x1d   :  { %268 = vmatprep.mubr.f32.mxu0 %v3727_v2  ;;  %3246 = vmatpush1.bf16.msra.mxu0 %v3856_v26 }
  0x1e   :  { %3248 = vmatprep.subr.bf16.mxu0 %v3859_v27 }
  0x20   :  { %2862 = vmatmul.mubr.msk.f32.gmra.mrb[14].mxu0 %vm54_vm0, %v22_v11 }
  0x21   :  { %274 = vmatprep.mubr.f32.mxu0 %v3727_v2  ;;  %3250 = vmatpush1.bf16.msra.mxu0 %v3876_v32 }
  0x22   :  { %3252 = vmatprep.subr.bf16.mxu0 %v3879_v33 }
  0x24   :  { %2863 = vmatmul.mubr.msk.f32.gmra.mrb[8].mxu0 %vm54_vm0, %v23_v13 }
  0x25   :  { %280 = vmatprep.mubr.f32.mxu0 %v3727_v2  ;;  %3254 = vmatpush1.bf16.msra.mxu0 %v3890_v36 }
  0x26   :  { %3256 = vmatprep.subr.bf16.mxu0 %v3791_v9 }
  0x28   :  { %2864 = vmatmul.mubr.msk.f32.gmra.mrb[6].mxu0 %vm54_vm0, %v24_v15 }
  0x29   :  { %286 = vmatprep.mubr.f32.mxu0 %v3727_v2 }
  0x2c   :  { %2865 = vmatmul.mubr.msk.f32.gmra.mrb[4].mxu0 %vm54_vm0, %v25_v10 }
  0x2d   :  { %292 = vmatprep.mubr.f32.mxu0 %v3727_v2 }
  0x30   :  { %2866 = vmatmul.mubr.msk.f32.gmra.mrb[2].mxu0 %vm54_vm0, %v26_v12 }
  0x31   :  { %298 = vmatprep.mubr.f32.mxu0 %v3727_v2 }
  0x34   :  { %2867 = vmatmul.mubr.msk.f32.gmra.mrb[0].mxu0 %vm54_vm0, %v27_v14 }
  0x35   :  { %428 = vmatprep.mubr.f32.mxu0 %v3727_v2 }
  0x3c   :  { %429 = vmatmul.mubr.f32.vlgmr.msra.gmra.mrb[0].mxu0 %v3727_v2 }
  0x3d   :  { %3258 = vmatpush1.bf16.msra.mxu0 %v3837_v20  ;;  %544 = vmatprep.mubr.f32.mxu0 %v3727_v2 }
  0x3e   :  { %3260 = vmatprep.subr.bf16.mxu0 %v3839_v21 }
  0x41   :  { %3262 = vmatpush1.bf16.msra.mxu0 %v3856_v26 }
  0x42   :  { %3264 = vmatprep.subr.bf16.mxu0 %v3859_v27 }
  0x45   :  { %3266 = vmatpush1.bf16.msra.mxu0 %v3876_v32 }
  0x46   :  { %3268 = vmatprep.subr.bf16.mxu0 %v3879_v33 }
  0x49   :  { %3270 = vmatpush1.bf16.msra.mxu0 %v3890_v36 }
  0x4a   :  { %3272 = vmatprep.subr.bf16.mxu0 %v3791_v9 }
 0x10f   :  { %v430_v45 = vpop.f32.mrb[0].mxu0 }
 0x110   :  { %v3482_v46 = vadd.f32 %v3918_v44, %v430_v45  ;;  %v432_v49 = vpop.f32.mrb[1].mxu0 }
 0x111   :  { %v3484_v54 = vadd.f32 %v3921_v53, %v432_v49 }
 0x112   :  { %v2868_v50 = vmul.f32 -1.442695, %v3482_v46 }
 0x113   :  { %v2869_v60 = vmul.f32 -1.442695, %v3484_v54 }
 0x114   :  { %3559 = vpow2.f32 %v2868_v50 }
 0x115   :  { %3561 = vtanh.f32 %v3484_v54 }
 0x11e   :  { %v3560_v55 = vpop.eup %3559 }
 0x11f   :  { %v440_v56 = vadd.f32 1.0, %v3560_v55  ;;  %v3562_v57 = vpop.eup %3561 }
 0x121   :  { %3563 = vrcp.f32 %v440_v56 }
 0x122   :  { %3565 = vpow2.f32 %v2869_v60 }
 0x12b   :  { %v3564_v58 = vpop.eup %3563 }
 0x12c   :  { %v451_v59 = vmul.f32 %v3564_v58, %v3562_v57  ;;  %v3566_v61 = vpop.eup %3565  ;;  %v450_v63 = vmul.f32 0.0, %v3564_v58 }
 0x12d   :  { %v447_v62 = vadd.f32 1.0, %v3566_v61 }
 0x12e   :  { %453 = vrot.lane.b32.xlu0 %v451_v59, %s3728_s24 }
 0x12f   :  { %3567 = vrcp.f32 %v447_v62 }
 0x139   :  { %v3568_v3 = vpop.eup %3567 }
 0x1a0   :  { %v454_v0 = vpop.permute.xlu0 %453 }
 0x1a1   :  { %v456_v1 = vadd.f32 %v454_v0, %v450_v63 }
 0x1a3   :  { %3569 = vtanh.f32 %v456_v1 }
 0x1ad   :  { %v3570_v4 = vpop.eup %3569 }
 0x1ae   :  { %v3925_v5 = vmul.f32 %v3570_v4, %v3568_v3 }
 0x1b0   :  { %460 = vrot.lane.b32.xlu0 %v3925_v5, %s3728_s24 }
 0x222   :  { %v461_v6 = vpop.permute.xlu0 %460 }
 0x223   :  { %464 = vst.msk [vmem:[#allocation4] sm:$0xff] %vm463_vm1, %v461_v6  ;;  %2870 = vmatmul.mubr.msk.f32.vlgmr.msra.gmra.mrb[2].mxu0 %vm360_vm2, %v461_v6 }
 0x224   :  { %3274 = vmatpush1.bf16.msra.mxu0 %v3837_v20  ;;  %660 = vmatprep.mubr.f32.mxu0 %v3727_v2 }
 0x225   :  { %3276 = vmatprep.subr.bf16.mxu0 %v3839_v21 }
 0x228   :  { %3278 = vmatpush1.bf16.msra.mxu0 %v3856_v26 }
 0x229   :  { %3280 = vmatprep.subr.bf16.mxu0 %v3859_v27 }
 0x22c   :  { %3282 = vmatpush1.bf16.msra.mxu0 %v3876_v32 }
 0x22d   :  { %3284 = vmatprep.subr.bf16.mxu0 %v3879_v33 }
 0x230   :  { %3286 = vmatpush1.bf16.msra.mxu0 %v3890_v36 }
 0x231   :  { %3288 = vmatprep.subr.bf16.mxu0 %v3791_v9 }
 0x2f6   :  { %v546_v7 = vpop.f32.mrb[2].mxu0 }
 0x2f7   :  { %v3486_v8 = vadd.f32 %v3918_v44, %v546_v7  ;;  %v548_v10 = vpop.f32.mrb[3].mxu0 }
 0x2f8   :  { %v3488_v12 = vadd.f32 %v3921_v53, %v548_v10 }
 0x2f9   :  { %v2871_v11 = vmul.f32 -1.442695, %v3486_v8 }
 0x2fa   :  { %v2872_v18 = vmul.f32 -1.442695, %v3488_v12 }
 0x2fb   :  { %3571 = vpow2.f32 %v2871_v11 }
 0x2fc   :  { %3573 = vtanh.f32 %v3488_v12 }
 0x305   :  { %v3572_v13 = vpop.eup %3571 }
 0x306   :  { %v556_v14 = vadd.f32 1.0, %v3572_v13  ;;  %v3574_v15 = vpop.eup %3573 }
 0x308   :  { %3575 = vrcp.f32 %v556_v14 }
 0x309   :  { %3577 = vpow2.f32 %v2872_v18 }
 0x312   :  { %v3576_v16 = vpop.eup %3575 }
 0x313   :  { %v567_v17 = vmul.f32 %v3576_v16, %v3574_v15  ;;  %v3578_v19 = vpop.eup %3577  ;;  %v566_v23 = vmul.f32 %v3576_v16, %v456_v1 }
 0x314   :  { %v563_v22 = vadd.f32 1.0, %v3578_v19 }
 0x315   :  { %569 = vrot.lane.b32.xlu1 %v567_v17, %s3728_s24 }
 0x316   :  { %3579 = vrcp.f32 %v563_v22 }
 0x320   :  { %v3580_v28 = vpop.eup %3579 }
 0x387   :  { %v570_v24 = vpop.permute.xlu1 %569 }
 0x388   :  { %v572_v25 = vadd.f32 %v570_v24, %v566_v23 }
 0x38a   :  { %3581 = vtanh.f32 %v572_v25 }
 0x394   :  { %v3582_v29 = vpop.eup %3581 }
 0x395   :  { %v3943_v30 = vmul.f32 %v3582_v29, %v3580_v28 }
 0x397   :  { %576 = vrot.lane.b32.xlu1 %v3943_v30, %s3728_s24 }
 0x409   :  { %v577_v31 = vpop.permute.xlu1 %576 }
 0x40a   :  { %580 = vst.msk [vmem:[#allocation4 + $0x8] sm:$0xff] %vm463_vm1, %v577_v31  ;;  %2873 = vmatmul.mubr.msk.f32.vlgmr.msra.gmra.mrb[4].mxu0 %vm360_vm2, %v577_v31 }
 0x40b   :  { %3290 = vmatpush1.bf16.msra.mxu0 %v3837_v20  ;;  %776 = vmatprep.mubr.f32.mxu0 %v3727_v2 }
 0x40c   :  { %3292 = vmatprep.subr.bf16.mxu0 %v3839_v21 }
 0x40f   :  { %3294 = vmatpush1.bf16.msra.mxu0 %v3856_v26 }
 0x410   :  { %3296 = vmatprep.subr.bf16.mxu0 %v3859_v27 }
 0x413   :  { %3298 = vmatpush1.bf16.msra.mxu0 %v3876_v32 }
 0x414   :  { %3300 = vmatprep.subr.bf16.mxu0 %v3879_v33 }
 0x417   :  { %3302 = vmatpush1.bf16.msra.mxu0 %v3890_v36 }
 0x418   :  { %3304 = vmatprep.subr.bf16.mxu0 %v3791_v9 }
 0x4dd   :  { %v662_v34 = vpop.f32.mrb[4].mxu0 }
 0x4de   :  { %v3490_v35 = vadd.f32 %v3918_v44, %v662_v34  ;;  %v664_v37 = vpop.f32.mrb[5].mxu0 }
 0x4df   :  { %v3492_v39 = vadd.f32 %v3921_v53, %v664_v37 }
 0x4e0   :  { %v2874_v38 = vmul.f32 -1.442695, %v3490_v35 }
 0x4e1   :  { %v2875_v46 = vmul.f32 -1.442695, %v3492_v39 }
 0x4e2   :  { %3583 = vpow2.f32 %v2874_v38 }
 0x4e3   :  { %3585 = vtanh.f32 %v3492_v39 }
 0x4ec   :  { %v3584_v40 = vpop.eup %3583 }
 0x4ed   :  { %v672_v41 = vadd.f32 1.0, %v3584_v40  ;;  %v3586_v42 = vpop.eup %3585  ;;  %v175_v40 = vpop.f32.mrb[0].mxu1 }
 0x4ef   :  { %3587 = vrcp.f32 %v672_v41  ;;  %v177_v41 = vpop.f32.mrb[1].mxu1 }
 0x4f0   :  { %3589 = vpow2.f32 %v2875_v46 }
 0x4f9   :  { %v3588_v43 = vpop.eup %3587 }
 0x4fa   :  { %v683_v45 = vmul.f32 %v3588_v43, %v3586_v42  ;;  %v3590_v47 = vpop.eup %3589  ;;  %v682_v49 = vmul.f32 %v3588_v43, %v572_v25 }
 0x4fb   :  { %v679_v48 = vadd.f32 1.0, %v3590_v47  ;;  %v3502_v47 = vadd.f32 %v3918_v44, %v175_v40 }
 0x4fc   :  { %685 = vrot.lane.b32.xlu0 %v683_v45, %s3728_s24 }
 0x4fd   :  { %3591 = vrcp.f32 %v679_v48  ;;  %v3505_v48 = vadd.f32 %v3921_v53, %v177_v41 }
 0x507   :  { %v3592_v52 = vpop.eup %3591 }
 0x56e   :  { %v686_v50 = vpop.permute.xlu0 %685 }
 0x56f   :  { %v688_v51 = vadd.f32 %v686_v50, %v682_v49 }
 0x571   :  { %3593 = vtanh.f32 %v688_v51 }
 0x57b   :  { %v3594_v54 = vpop.eup %3593 }
 0x57c   :  { %v3961_v55 = vmul.f32 %v3594_v54, %v3592_v52 }
 0x57e   :  { %692 = vrot.lane.b32.xlu1 %v3961_v55, %s3728_s24 }
 0x5f0   :  { %v693_v56 = vpop.permute.xlu1 %692 }
 0x5f1   :  { %696 = vst.msk [vmem:[#allocation4 + $0x10] sm:$0xff] %vm463_vm1, %v693_v56  ;;  %2876 = vmatmul.mubr.msk.f32.vlgmr.msra.gmra.mrb[6].mxu0 %vm360_vm2, %v693_v56 }
 0x5f2   :  { %3306 = vmatpush1.bf16.msra.mxu0 %v3837_v20  ;;  %892 = vmatprep.mubr.f32.mxu0 %v3727_v2 }
 0x5f3   :  { %3308 = vmatprep.subr.bf16.mxu0 %v3839_v21 }
 0x5f6   :  { %3310 = vmatpush1.bf16.msra.mxu0 %v3856_v26 }
 0x5f7   :  { %3312 = vmatprep.subr.bf16.mxu0 %v3859_v27 }
 0x5fa   :  { %3314 = vmatpush1.bf16.msra.mxu0 %v3876_v32 }
 0x5fb   :  { %3316 = vmatprep.subr.bf16.mxu0 %v3879_v33 }
 0x5fe   :  { %3318 = vmatpush1.bf16.msra.mxu0 %v3890_v36 }
 0x5ff   :  { %3320 = vmatprep.subr.bf16.mxu0 %v3791_v9 }
 0x6c4   :  { %v778_v57 = vpop.f32.mrb[6].mxu0 }
 0x6c5   :  { %v3494_v58 = vadd.f32 %v3918_v44, %v778_v57  ;;  %v780_v59 = vpop.f32.mrb[7].mxu0 }
 0x6c6   :  { %v3496_v61 = vadd.f32 %v3921_v53, %v780_v59 }
 0x6c7   :  { %v2877_v60 = vmul.f32 -1.442695, %v3494_v58 }
 0x6c8   :  { %v2878_v4 = vmul.f32 -1.442695, %v3496_v61 }
 0x6c9   :  { %3595 = vpow2.f32 %v2877_v60 }
 0x6ca   :  { %3597 = vtanh.f32 %v3496_v61 }
 0x6d3   :  { %v3596_v62 = vpop.eup %3595 }
 0x6d4   :  { %v788_v63 = vadd.f32 1.0, %v3596_v62  ;;  %v3598_v0 = vpop.eup %3597 }
 0x6d6   :  { %3599 = vrcp.f32 %v788_v63 }
 0x6d7   :  { %3601 = vpow2.f32 %v2878_v4 }
 0x6e0   :  { %v3600_v1 = vpop.eup %3599 }
 0x6e1   :  { %v799_v3 = vmul.f32 %v3600_v1, %v3598_v0  ;;  %v3602_v6 = vpop.eup %3601  ;;  %v798_v8 = vmul.f32 %v3600_v1, %v688_v51 }
 0x6e2   :  { %v795_v7 = vadd.f32 1.0, %v3602_v6 }
 0x6e3   :  { %801 = vrot.lane.b32.xlu0 %v799_v3, %s3728_s24  ;;  %v181_v3 = vpop.f32.mrb[2].mxu1 }
 0x6e4   :  { %3603 = vrcp.f32 %v795_v7  ;;  %v183_v4 = vpop.f32.mrb[3].mxu1 }
 0x6ee   :  { %v3604_v12 = vpop.eup %3603 }
 0x755   :  { %v802_v10 = vpop.permute.xlu0 %801 }
 0x756   :  { %v804_v11 = vadd.f32 %v802_v10, %v798_v8 }
 0x758   :  { %3605 = vtanh.f32 %v804_v11 }
 0x762   :  { %v3606_v13 = vpop.eup %3605 }
 0x763   :  { %v3979_v14 = vmul.f32 %v3606_v13, %v3604_v12  ;;  %v3511_v12 = vadd.f32 %v3921_v53, %v183_v4 }
 0x765   :  { %808 = vrot.lane.b32.xlu1 %v3979_v14, %s3728_s24 }
 0x7d7   :  { %v809_v15 = vpop.permute.xlu1 %808 }
 0x7d8   :  { %812 = vst.msk [vmem:[#allocation4 + $0x18] sm:$0xff] %vm463_vm1, %v809_v15  ;;  %2879 = vmatmul.mubr.msk.f32.vlgmr.msra.gmra.mrb[8].mxu0 %vm360_vm2, %v809_v15 }
 0x7d9   :  { %3322 = vmatpush1.bf16.msra.mxu0 %v3837_v20  ;;  %1008 = vmatprep.mubr.f32.mxu0 %v3727_v2 }
 0x7da   :  { %3324 = vmatprep.subr.bf16.mxu0 %v3839_v21 }
 0x7dd   :  { %3326 = vmatpush1.bf16.msra.mxu0 %v3856_v26 }
 0x7de   :  { %3328 = vmatprep.subr.bf16.mxu0 %v3859_v27 }
 0x7e1   :  { %3330 = vmatpush1.bf16.msra.mxu0 %v3876_v32 }
 0x7e2   :  { %3332 = vmatprep.subr.bf16.mxu0 %v3879_v33 }
 0x7e5   :  { %3334 = vmatpush1.bf16.msra.mxu0 %v3890_v36 }
 0x7e6   :  { %3336 = vmatprep.subr.bf16.mxu0 %v3791_v9 }
 0x8ab   :  { %v894_v16 = vpop.f32.mrb[8].mxu0 }
 0x8ac   :  { %v3498_v17 = vadd.f32 %v3918_v44, %v894_v16  ;;  %v896_v18 = vpop.f32.mrb[9].mxu0 }
 0x8ad   :  { %v3500_v22 = vadd.f32 %v3921_v53, %v896_v18 }
 0x8ae   :  { %v2880_v19 = vmul.f32 -1.442695, %v3498_v17 }
 0x8af   :  { %v2881_v31 = vmul.f32 -1.442695, %v3500_v22 }
 0x8b0   :  { %3607 = vpow2.f32 %v2880_v19 }
 0x8b1   :  { %3609 = vtanh.f32 %v3500_v22 }
 0x8ba   :  { %v3608_v23 = vpop.eup %3607 }
 0x8bb   :  { %v904_v24 = vadd.f32 1.0, %v3608_v23  ;;  %v3610_v25 = vpop.eup %3609 }
 0x8bd   :  { %3611 = vrcp.f32 %v904_v24 }
 0x8be   :  { %3613 = vpow2.f32 %v2881_v31 }
 0x8c7   :  { %v3612_v28 = vpop.eup %3611 }
 0x8c8   :  { %v915_v29 = vmul.f32 %v3612_v28, %v3610_v25  ;;  %v3614_v34 = vpop.eup %3613  ;;  %v914_v37 = vmul.f32 %v3612_v28, %v804_v11  ;;  %v3508_v11 = vadd.f32 %v3918_v44, %v181_v3  ;;  %v187_v25 = vpop.f32.mrb[4].mxu1 }
 0x8c9   :  { %v911_v35 = vadd.f32 1.0, %v3614_v34  ;;  %v189_v28 = vpop.f32.mrb[5].mxu1 }
 0x8ca   :  { %917 = vrot.lane.b32.xlu0 %v915_v29, %s3728_s24 }
 0x8cb   :  { %3615 = vrcp.f32 %v911_v35 }
 0x8d5   :  { %v3616_v42 = vpop.eup %3615 }
 0x93c   :  { %v918_v38 = vpop.permute.xlu0 %917 }
 0x93d   :  { %v920_v39 = vadd.f32 %v918_v38, %v914_v37  ;;  %v3514_v37 = vadd.f32 %v3918_v44, %v187_v25  ;;  %v3517_v38 = vadd.f32 %v3921_v53, %v189_v28  ;;  %v1300_v44 = vld [vmem:[%s4382_s2 + $0x20] sm:$0xff]  ;;  %v1301_v53 = vld [vmem:[%s4382_s2 + $0x28] sm:$0xff]  ;;  %v1282_v28 = vld [vmem:[#allocation4 + $0x10] sm:$0xff] }
 0x93e   :  { %v1281_v25 = vld [vmem:[#allocation4 + $0x8] sm:$0xff] }
 0x93f   :  { %3617 = vtanh.f32 %v920_v39 }
 0x949   :  { %v3618_v43 = vpop.eup %3617 }
 0x94a   :  { %v3997_v45 = vmul.f32 %v3618_v43, %v3616_v42 }
 0x94c   :  { %924 = vrot.lane.b32.xlu1 %v3997_v45, %s3728_s24 }
 0x9be   :  { %v925_v46 = vpop.permute.xlu1 %924 }
 0x9bf   :  { %928 = vst.msk [vmem:[#allocation4 + $0x20] sm:$0xff] %vm463_vm1, %v925_v46  ;;  %2882 = vmatmul.mubr.msk.f32.vlgmr.msra.gmra.mrb[14].mxu0 %vm360_vm2, %v925_v46 }
 0x9c0   :  { %3338 = vmatpush1.bf16.msra.mxu0 %v3837_v20  ;;  %1124 = vmatprep.mubr.f32.mxu0 %v3727_v2 }
 0x9c1   :  { %3340 = vmatprep.subr.bf16.mxu0 %v3839_v21 }
 0x9c4   :  { %3342 = vmatpush1.bf16.msra.mxu0 %v3856_v26 }
 0x9c5   :  { %3344 = vmatprep.subr.bf16.mxu0 %v3859_v27 }
 0x9c8   :  { %3346 = vmatpush1.bf16.msra.mxu0 %v3876_v32 }
 0x9c9   :  { %3348 = vmatprep.subr.bf16.mxu0 %v3879_v33 }
 0x9cc   :  { %3350 = vmatpush1.bf16.msra.mxu0 %v3890_v36 }
 0x9cd   :  { %3352 = vmatprep.subr.bf16.mxu0 %v3791_v9 }
 0xa92   :  { %v1010_v49 = vpop.f32.mrb[14].mxu0 }
 0xa93   :  { %v3503_v50 = vadd.f32 %v3502_v47, %v1010_v49  ;;  %v1012_v51 = vpop.f32.mrb[15].mxu0 }
 0xa94   :  { %v3506_v52 = vadd.f32 %v3505_v48, %v1012_v51  ;;  %v3367_v51 = vpack.c.bf16 %v1301_v53, %v1300_v44 }
 0xa95   :  { %v2883_v54 = vmul.f32 -1.442695, %v3503_v50 }
 0xa96   :  { %v2884_v9 = vmul.f32 -1.442695, %v3506_v52  ;;  %3368 = vmatprep.subr.bf16.mxu1 %v3367_v51 }
 0xa97   :  { %3619 = vpow2.f32 %v2883_v54  ;;  %3370 = vmatpush3.bf16.msra.mxu1 %v3367_v51 }
 0xa98   :  { %3621 = vtanh.f32 %v3506_v52 }
 0xaa1   :  { %v3620_v56 = vpop.eup %3619 }
 0xaa2   :  { %v1020_v57 = vadd.f32 1.0, %v3620_v56  ;;  %v3622_v58 = vpop.eup %3621 }
 0xaa4   :  { %3623 = vrcp.f32 %v1020_v57 }
 0xaa5   :  { %3625 = vpow2.f32 %v2884_v9 }
 0xaae   :  { %v3624_v59 = vpop.eup %3623 }
 0xaaf   :  { %v1031_v60 = vmul.f32 %v3624_v59, %v3622_v58  ;;  %v3626_v61 = vpop.eup %3625  ;;  %v1030_v63 = vmul.f32 %v3624_v59, %v920_v39  ;;  %v1303_v58 = vld [vmem:[%s4382_s2 + $0x38] sm:$0xff] }
 0xab0   :  { %v1027_v62 = vadd.f32 1.0, %v3626_v61 }
 0xab1   :  { %1033 = vrot.lane.b32.xlu0 %v1031_v60, %s3728_s24 }
 0xab2   :  { %3627 = vrcp.f32 %v1027_v62 }
 0xabc   :  { %v3628_v6 = vpop.eup %3627 }
 0xb23   :  { %v1034_v0 = vpop.permute.xlu0 %1033 }
 0xb24   :  { %v1036_v1 = vadd.f32 %v1034_v0, %v1030_v63  ;;  %v1296_v63 = vld [vmem:[%s4382_s2] sm:$0xff]  ;;  %v1297_v0 = vld [vmem:[%s4382_s2 + $0x8] sm:$0xff] }
 0xb25   :  { %v3375_v3 = vpack.c.bf16 %v1297_v0, %v1296_v63 }
 0xb26   :  { %3629 = vtanh.f32 %v1036_v1 }
 0xb30   :  { %v3630_v7 = vpop.eup %3629 }
 0xb31   :  { %v4015_v8 = vmul.f32 %v3630_v7, %v3628_v6 }
 0xb33   :  { %1040 = vrot.lane.b32.xlu1 %v4015_v8, %s3728_s24 }
 0xba5   :  { %v1041_v10 = vpop.permute.xlu1 %1040 }
 0xba6   :  { %1044 = vst.msk [vmem:[#allocation4 + $0x28] sm:$0xff] %vm463_vm1, %v1041_v10  ;;  %2885 = vmatmul.mubr.msk.f32.vlgmr.msra.gmra.mrb[12].mxu0 %vm360_vm2, %v1041_v10 }
 0xba7   :  { %3354 = vmatpush1.bf16.msra.mxu0 %v3837_v20  ;;  %1239 = vmatprep.mubr.f32.mxu0 %v3727_v2 }
 0xba8   :  { %3356 = vmatprep.subr.bf16.mxu0 %v3839_v21 }
 0xbab   :  { %3358 = vmatpush1.bf16.msra.mxu0 %v3856_v26 }
 0xbac   :  { %3360 = vmatprep.subr.bf16.mxu0 %v3859_v27 }
 0xbaf   :  { %3362 = vmatpush1.bf16.msra.mxu0 %v3876_v32 }
 0xbb0   :  { %3364 = vmatprep.subr.bf16.mxu0 %v3879_v33 }
 0xbb3   :  { %3366 = vmatpush1.bf16.msra.mxu0 %v3890_v36 }
 0xc79   :  { %v1126_v13 = vpop.f32.mrb[12].mxu0 }
 0xc7a   :  { %v3509_v20 = vadd.f32 %v3508_v11, %v1126_v13  ;;  %v1128_v15 = vpop.f32.mrb[13].mxu0  ;;  %v1298_v11 = vld [vmem:[%s4382_s2 + $0x10] sm:$0xff] }
 0xc7b   :  { %v3512_v16 = vadd.f32 %v3511_v12, %v1128_v15 }
 0xc7c   :  { %v2886_v17 = vmul.f32 -1.442695, %v3509_v20 }
 0xc7d   :  { %v2887_v33 = vmul.f32 -1.442695, %v3512_v16 }
 0xc7e   :  { %3631 = vpow2.f32 %v2886_v17 }
 0xc7f   :  { %3633 = vtanh.f32 %v3512_v16 }
 0xc88   :  { %v3632_v21 = vpop.eup %3631 }
 0xc89   :  { %v1136_v26 = vadd.f32 1.0, %v3632_v21  ;;  %v3634_v27 = vpop.eup %3633 }
 0xc8b   :  { %3635 = vrcp.f32 %v1136_v26  ;;  %v3730_v26 = vmov 0.0|0.0  }
 0xc8c   :  { %3637 = vpow2.f32 %v2887_v33  ;;  %v1586_v33 = vld [vmem:[%s4382_s2 + $0x88] sm:$0xff] }
 0xc95   :  { %v3636_v32 = vpop.eup %3635 }
 0xc96   :  { %v1147_v18 = vmul.f32 %v3636_v32, %v3634_v27  ;;  %v3638_v36 = vpop.eup %3637  ;;  %v1146_v22 = vmul.f32 %v3636_v32, %v1036_v1 }
 0xc97   :  { %v1143_v19 = vadd.f32 1.0, %v3638_v36 }
 0xc98   :  { %1149 = vrot.lane.b32.xlu0 %v1147_v18, %s3728_s24  ;;  %v1585_v18 = vld [vmem:[%s4382_s2 + $0x80] sm:$0xff] }
 0xc99   :  { %3639 = vrcp.f32 %v1143_v19  ;;  %v1280_v19 = vld [vmem:[#allocation4] sm:$0xff] }
 0xca3   :  { %v3640_v29 = vpop.eup %3639 }
 0xd0a   :  { %v1150_v23 = vpop.permute.xlu0 %1149 }
 0xd0b   :  { %v1152_v24 = vadd.f32 %v1150_v23, %v1146_v22  ;;  %v4105_v22 = vpack.c.bf16 %v1586_v33, %v1585_v18  ;;  %v1587_v23 = vld [vmem:[%s4382_s2 + $0x90] sm:$0xff] }
 0xd0d   :  { %3641 = vtanh.f32 %v1152_v24 }
 0xd17   :  { %v3642_v31 = vpop.eup %3641 }
 0xd18   :  { %v1154_v34 = vmul.f32 %v3642_v31, %v3640_v29  ;;  %v1283_v31 = vld [vmem:[#allocation4 + $0x18] sm:$0xff] }
 0xd1a   :  { %1156 = vrot.lane.b32.xlu1 %v1154_v34, %s3728_s24 }
 0xd8c   :  { %v1157_v35 = vpop.permute.xlu1 %1156 }
 0xd8d   :  { %1160 = vst.msk [vmem:[#allocation4 + $0x30] sm:$0xff] %vm463_vm1, %v1157_v35  ;;  %2888 = vmatmul.mubr.msk.f32.vlgmr.msra.gmra.mrb[10].mxu0 %vm360_vm2, %v1157_v35  ;;  %v1285_v35 = vld [vmem:[#allocation4 + $0x28] sm:$0xff] }
 0xe60   :  { %v1241_v39 = vpop.f32.mrb[10].mxu0 }
 0xe61   :  { %v3515_v40 = vadd.f32 %v3514_v37, %v1241_v39  ;;  %v1243_v41 = vpop.f32.mrb[11].mxu0  ;;  %v1286_v37 = vld [vmem:[#allocation4 + $0x30] sm:$0xff]  ;;  %v2907_v39 = vld [vmem:[%s4381_s4 + $0x4] ss:$0 sm:$0xff] }
 0xe62   :  { %v3518_v42 = vadd.f32 %v3517_v38, %v1243_v41 }
 0xe63   :  { %v2889_v43 = vmul.f32 -1.442695, %v3515_v40 }
 0xe64   :  { %v2890_v52 = vmul.f32 -1.442695, %v3518_v42 }
 0xe65   :  { %3643 = vpow2.f32 %v2889_v43 }
 0xe66   :  { %3645 = vtanh.f32 %v3518_v42 }
 0xe6f   :  { %v3644_v46 = vpop.eup %3643 }
 0xe70   :  { %v1251_v47 = vadd.f32 1.0, %v3644_v46  ;;  %v3646_v48 = vpop.eup %3645 }
 0xe72   :  { %3647 = vrcp.f32 %v1251_v47 }
 0xe73   :  { %3649 = vpow2.f32 %v2890_v52 }
 0xe7c   :  { %v3648_v49 = vpop.eup %3647 }
 0xe7d   :  { %v1262_v50 = vmul.f32 %v3648_v49, %v3646_v48  ;;  %v1261_v56 = vmul.f32 %v3648_v49, %v1152_v24  ;;  %v1588_v24 = vld [vmem:[%s4382_s2 + $0x98] sm:$0xff] }
 0xe7e   :  { %v4116_v29 = vpack.c.bf16 %v1588_v24, %v1587_v23 }
 0xe7f   :  { %1264 = vrot.lane.b32.xlu0 %v1262_v50, %s3728_s24 }
 0xe83   :  { %1161 = vrot.lane.b32.xlu0 %v1154_v34, %s3729_s25  ;;  %v1284_v34 = vld [vmem:[#allocation4 + $0x20] sm:$0xff] }
 0xe87   :  { %929 = vrot.lane.b32.xlu0 %v3997_v45, %s3729_s25  ;;  %v3650_v45 = vpop.eup %3649 }
 0xe88   :  { %v1258_v54 = vadd.f32 1.0, %v3650_v45 }
 0xe8a   :  { %3651 = vrcp.f32 %v1258_v54 }
 0xe8b   :  { %697 = vrot.lane.b32.xlu0 %v3961_v55, %s3729_s25 }
 0xe8f   :  { %465 = vrot.lane.b32.xlu0 %v3925_v5, %s3729_s25  ;;  %v1302_v5 = vld [vmem:[%s4382_s2 + $0x30] sm:$0xff] }
 0xe90   :  { %v3371_v60 = vpack.c.bf16 %v1303_v58, %v1302_v5 }
 0xe92   :  { %3372 = vmatprep.subr.bf16.mxu1 %v3371_v60 }
 0xe93   :  { %3374 = vmatpush3.bf16.msra.mxu1 %v3371_v60 }
 0xe94   :  { %v3652_v61 = vpop.eup %3651  ;;  %3376 = vmatprep.subr.bf16.mxu1 %v3375_v3 }
 0xef1   :  { %v1265_v55 = vpop.permute.xlu0 %1264 }
 0xef2   :  { %v1267_v57 = vadd.f32 %v1265_v55, %v1261_v56 }
 0xef4   :  { %3653 = vtanh.f32 %v1267_v57 }
 0xef5   :  { %v1162_v59 = vpop.permute.xlu0 %1161 }
 0xef6   :  { %1165 = vst.msk [vmem:[#allocation5 + $0x8] sm:$0xff] %vm463_vm1, %v1162_v59 }
 0xef9   :  { %v930_v9 = vpop.permute.xlu0 %929 }
 0xefa   :  { %933 = vst.msk [vmem:[#allocation5 + $0x18] sm:$0xff] %vm463_vm1, %v930_v9 }
 0xefd   :  { %v698_v62 = vpop.permute.xlu0 %697 }
 0xefe   :  { %v3654_v1 = vpop.eup %3653  ;;  %701 = vst.msk [vmem:[#allocation5 + $0x28] sm:$0xff] %vm463_vm1, %v698_v62 }
 0xeff   :  { %v1269_v4 = vmul.f32 %v3654_v1, %v3652_v61 }
 0xf01   :  { %1276 = vrot.lane.b32.xlu1 %v1269_v4, %s3729_s25  ;;  %v466_v6 = vpop.permute.xlu0 %465  ;;  %v1291_v16 = vld [vmem:[#allocation5 + $0x18] sm:$0xff] }
 0xf02   :  { %469 = vst.msk [vmem:[#allocation5 + $0x38] sm:$0xff] %vm463_vm1, %v466_v6 }
 0xf05   :  { %1045 = vrot.lane.b32.xlu1 %v4015_v8, %s3729_s25  ;;  %v1299_v8 = vld [vmem:[%s4382_s2 + $0x18] sm:$0xff]  ;;  %v1293_v27 = vld [vmem:[#allocation5 + $0x28] sm:$0xff] }
 0xf06   :  { %v3379_v13 = vpack.c.bf16 %v1299_v8, %v1298_v11 }
 0xf09   :  { %813 = vrot.lane.b32.xlu1 %v3979_v14, %s3729_s25  ;;  %v4100_v36 = vld [vmem:[#allocation5 + $0x38] sm:$0xff] }
 0xf0d   :  { %581 = vrot.lane.b32.xlu1 %v3943_v30, %s3729_s25  ;;  %v1289_v30 = vld [vmem:[#allocation5 + $0x8] sm:$0xff] }
 0xf11   :  { %1271 = vrot.lane.b32.xlu1 %v1269_v4, %s3728_s24 }
 0xf73   :  { %v1277_v7 = vpop.permute.xlu1 %1276 }
 0xf74   :  { %1279 = vst.msk [vmem:[#allocation5] sm:$0xff] %vm463_vm1, %v1277_v7 }
 0xf77   :  { %v1046_v10 = vpop.permute.xlu1 %1045 }
 0xf78   :  { %1049 = vst.msk [vmem:[#allocation5 + $0x10] sm:$0xff] %vm463_vm1, %v1046_v10 }
 0xf7b   :  { %v814_v14 = vpop.permute.xlu1 %813  ;;  %v1288_v12 = vld [vmem:[#allocation5] sm:$0xff] }
 0xf7c   :  { %817 = vst.msk [vmem:[#allocation5 + $0x20] sm:$0xff] %vm463_vm1, %v814_v14  ;;  %3040 = vmatprep.mubr.msk.f32.mxu1 %vm463_vm1, %v1288_v12 }
 0xf7d   :  { %3041 = vmatmul.mubr.msk.f32.vlgmr.msra.gmra.mrb[6].mxu1 %vm463_vm1, %v1289_v30 }
 0xf7e   :  { %3378 = vmatpush3.bf16.msra.mxu1 %v3375_v3 }
 0xf7f   :  { %v582_v20 = vpop.permute.xlu1 %581  ;;  %v1290_v15 = vld [vmem:[#allocation5 + $0x10] sm:$0xff]  ;;  %3380 = vmatprep.subr.bf16.mxu1 %v3379_v13 }
 0xf80   :  { %585 = vst.msk [vmem:[#allocation5 + $0x30] sm:$0xff] %vm463_vm1, %v582_v20  ;;  %3043 = vmatprep.mubr.msk.f32.mxu1 %vm463_vm1, %v1290_v15 }
 0xf81   :  { %3044 = vmatmul.mubr.msk.f32.gmra.mrb[8].mxu1 %vm463_vm1, %v1291_v16 }
 0xf82   :  { %3382 = vmatpush3.bf16.msra.mxu1 %v3379_v13 }
 0xf83   :  { %v1272_v17 = vpop.permute.xlu1 %1271  ;;  %v1292_v21 = vld [vmem:[#allocation5 + $0x20] sm:$0xff]  ;;  %3383 = vmatprep.subr.bf16.mxu1 %v3730_v26 }
 0xf84   :  { %1275 = vst.msk [vmem:[#allocation4 + $0x38] sm:$0xff] %vm463_vm1, %v1272_v17  ;;  %3046 = vmatprep.mubr.msk.f32.mxu1 %vm463_vm1, %v1292_v21 }
 0xf85   :  { %3047 = vmatmul.mubr.msk.f32.gmra.mrb[10].mxu1 %vm463_vm1, %v1293_v27 }
 0xf87   :  { %v1294_v32 = vld [vmem:[#allocation5 + $0x30] sm:$0xff] }
 0xf88   :  { %3049 = vmatprep.mubr.msk.f32.mxu1 %vm463_vm1, %v1294_v32 }
 0xf89   :  { %3050 = vmatmul.mubr.msk.f32.gmra.mrb[12].mxu1 %vm463_vm1, %v4100_v36 }
 0xf8a   :  { %3060 = vmatprep.mubr.msk.f32.mxu1 %vm463_vm1, %v1280_v19 }
 0xf8b   :  { %v4125_v38 = vld [vmem:[#allocation4 + $0x38] sm:$0xff] }
 0xf8d   :  { %3061 = vmatmul.mubr.msk.f32.vlgmr.msra.gmra.mrb[6].mxu1 %vm463_vm1, %v1281_v25 }
 0xf8e   :  { %3063 = vmatprep.mubr.msk.f32.mxu1 %vm463_vm1, %v1282_v28  ;;  %3385 = vmatpush3.bf16.msra.mxu1 %v4105_v22 }
 0xf8f   :  { %3386 = vmatprep.subr.bf16.mxu1 %v3730_v26 }
 0xf91   :  { %3064 = vmatmul.mubr.msk.f32.gmra.mrb[8].mxu1 %vm463_vm1, %v1283_v31 }
 0xf92   :  { %3066 = vmatprep.mubr.msk.f32.mxu1 %vm463_vm1, %v1284_v34  ;;  %3388 = vmatpush3.bf16.msra.mxu1 %v4116_v29 }
 0xf93   :  { %3389 = vmatprep.subr.bf16.mxu1 %v3730_v26 }
 0xf95   :  { %3067 = vmatmul.mubr.msk.f32.gmra.mrb[10].mxu1 %vm463_vm1, %v1285_v35 }
 0xf96   :  { %3069 = vmatprep.mubr.msk.f32.mxu1 %vm463_vm1, %v1286_v37 }
 0xf99   :  { %3070 = vmatmul.mubr.msk.f32.gmra.mrb[12].mxu1 %vm463_vm1, %v4125_v38 }
 0xf9a   :  { %3080 = vmatprep.mubr.msk.f32.mxu1 %vm3731_vm3, %v3727_v2 }
 0xf9d   :  { %3081 = vmatmul.mubr.f32.vlgmr.msra.gmra.mrb[14].mxu1 %v3727_v2 }
 0xf9e   :  { %3391 = vmatpush3.bf16.msra.mxu1 %v4105_v22  ;;  %3091 = vmatprep.mubr.msk.f32.mxu1 %vm3731_vm3, %v3727_v2 }
 0xf9f   :  { %3392 = vmatprep.subr.bf16.mxu1 %v3730_v26 }
 0xfa2   :  { %3394 = vmatpush3.bf16.msra.mxu1 %v4116_v29 }
 0xfa3   :  { %3395 = vmatprep.subr.bf16.mxu1 %v3730_v26 }
0x1060   :  { %v3062_v40 = vpop.f32.mrb[6].mxu1 }
0x1061   :  { %v1570_v41 = vadd.f32 %v3062_v40, %v2907_v39  ;;  %v1523_v42 = vpop.f32.mrb[7].mxu1 }
0x1062   :  { %v1569_v56 = vadd.f32 %v2907_v39, %v1523_v42 }
0x1064   :  { %v3065_v43 = vpop.f32.mrb[8].mxu1 }
0x1065   :  { %v4141_v46 = vadd.f32 %v3065_v43, %v2907_v39  ;;  %v1533_v47 = vpop.f32.mrb[9].mxu1 }
0x1066   :  { %v4143_v48 = vadd.f32 %v2907_v39, %v1533_v47 }
0x1068   :  { %v3068_v49 = vpop.f32.mrb[10].mxu1 }
0x1069   :  { %v4145_v50 = vadd.f32 %v3068_v49, %v2907_v39  ;;  %v1543_v44 = vpop.f32.mrb[11].mxu1 }
0x106a   :  { %v4147_v53 = vadd.f32 %v2907_v39, %v1543_v44 }
0x106c   :  { %v3071_v51 = vpop.f32.mrb[12].mxu1 }
0x106d   :  { %v4149_v52 = vadd.f32 %v3071_v51, %v2907_v39  ;;  %v1553_v45 = vpop.f32.mrb[13].mxu1 }
0x106e   :  { %v4151_v54 = vadd.f32 %v2907_v39, %v1553_v45 }
0x1070   :  { %v1658_v55 = vpop.f32.mrb[14].mxu1 }
0x1071   :  { %v1662_v57 = vadd.f32 %v1658_v55, %v1569_v56  ;;  %v3082_v5 = vpop.f32.mrb[15].mxu1 }
0x1073   :  { %3655 = vtanh.f32 %v1662_v57  ;;  %v2908_v59 = vmul.f32 -1.442695, %v1662_v57 }
0x1075   :  { %3657 = vpow2.f32 %v2908_v59 }
0x107d   :  { %v3656_v58 = vpop.eup %3655 }
0x107e   :  { %1672 = vrot.lane.b32.xlu0 %v3656_v58, %s3728_s24 }
0x107f   :  { %v3658_v60 = vpop.eup %3657 }
0x1080   :  { %v1666_v9 = vadd.f32 1.0, %v3658_v60 }
0x1082   :  { %3659 = vrcp.f32 %v1666_v9 }
0x108c   :  { %v3660_v61 = vpop.eup %3659 }
0x108d   :  { %v1670_v0 = vmul.f32 0.0, %v3660_v61 }
0x10f0   :  { %v1673_v62 = vpop.permute.xlu0 %1672 }
0x10f1   :  { %v1675_v63 = vmul.f32 %v3660_v61, %v1673_v62 }
0x10f3   :  { %1677 = vrot.lane.b32.xlu1 %v1675_v63, %s3729_s25 }
0x1165   :  { %v1678_v1 = vpop.permute.xlu1 %1677 }
0x1166   :  { %v1680_v3 = vadd.f32 %v1678_v1, %v1670_v0 }
0x1168   :  { %3661 = vtanh.f32 %v1680_v3 }
0x1172   :  { %v3662_v4 = vpop.eup %3661 }
0x1173   :  { %1683 = vrot.lane.b32.xlu0 %v3662_v4, %s3728_s24 }
0x11e5   :  { %v1684_v6 = vpop.permute.xlu0 %1683 }
0x11e6   :  { %v1686_v7 = vmul.f32 %v3660_v61, %v1684_v6 }
0x11e8   :  { %1690 = vrot.lane.b32.xlu1 %v1686_v7, %s3729_s25 }
0x125a   :  { %v1691_v10 = vpop.permute.xlu1 %1690 }
0x125b   :  { %3092 = vmatmul.mubr.msk.f32.vlgmr.msra.gmra.mrb[16].mxu1 %vm463_vm1, %v1691_v10 }
0x125c   :  { %3397 = vmatpush3.bf16.msra.mxu1 %v4105_v22  ;;  %3102 = vmatprep.mubr.msk.f32.mxu1 %vm3731_vm3, %v3727_v2 }
0x125d   :  { %3398 = vmatprep.subr.bf16.mxu1 %v3730_v26 }
0x1260   :  { %3400 = vmatpush3.bf16.msra.mxu1 %v4116_v29 }
0x1261   :  { %3401 = vmatprep.subr.bf16.mxu1 %v3730_v26 }
0x132e   :  { %v1760_v11 = vpop.f32.mrb[16].mxu1 }
0x132f   :  { %v1764_v8 = vadd.f32 %v1760_v11, %v1570_v41  ;;  %v3093_v14 = vpop.f32.mrb[17].mxu1 }
0x1331   :  { %3663 = vtanh.f32 %v1764_v8  ;;  %v2910_v13 = vmul.f32 -1.442695, %v1764_v8 }
0x1333   :  { %3665 = vpow2.f32 %v2910_v13 }
0x133b   :  { %v3664_v12 = vpop.eup %3663 }
0x133c   :  { %1774 = vrot.lane.b32.xlu0 %v3664_v12, %s3728_s24 }
0x133d   :  { %v3666_v30 = vpop.eup %3665 }
0x133e   :  { %v1768_v20 = vadd.f32 1.0, %v3666_v30 }
0x1340   :  { %3667 = vrcp.f32 %v1768_v20 }
0x134a   :  { %v3668_v15 = vpop.eup %3667 }
0x134b   :  { %v1772_v21 = vmul.f32 %v3668_v15, %v1680_v3 }
0x13ae   :  { %v1775_v16 = vpop.permute.xlu0 %1774 }
0x13af   :  { %v1777_v17 = vmul.f32 %v3668_v15, %v1775_v16 }
0x13b1   :  { %1779 = vrot.lane.b32.xlu1 %v1777_v17, %s3729_s25 }
0x1423   :  { %v1780_v27 = vpop.permute.xlu1 %1779 }
0x1424   :  { %v1782_v32 = vadd.f32 %v1780_v27, %v1772_v21 }
0x1426   :  { %3669 = vtanh.f32 %v1782_v32 }
0x1430   :  { %v3670_v18 = vpop.eup %3669 }
0x1431   :  { %1785 = vrot.lane.b32.xlu0 %v3670_v18, %s3728_s24 }
0x14a3   :  { %v1786_v33 = vpop.permute.xlu0 %1785 }
0x14a4   :  { %v1788_v19 = vmul.f32 %v3668_v15, %v1786_v33 }
0x14a6   :  { %1792 = vrot.lane.b32.xlu1 %v1788_v19, %s3729_s25 }
0x1518   :  { %v1793_v23 = vpop.permute.xlu1 %1792 }
0x1519   :  { %3103 = vmatmul.mubr.msk.f32.vlgmr.msra.gmra.mrb[18].mxu1 %vm463_vm1, %v1793_v23 }
0x151a   :  { %3403 = vmatpush3.bf16.msra.mxu1 %v4105_v22  ;;  %3113 = vmatprep.mubr.msk.f32.mxu1 %vm3731_vm3, %v3727_v2 }
0x151b   :  { %3404 = vmatprep.subr.bf16.mxu1 %v3730_v26 }
0x151e   :  { %3406 = vmatpush3.bf16.msra.mxu1 %v4116_v29 }
0x151f   :  { %3407 = vmatprep.subr.bf16.mxu1 %v3730_v26 }
0x15ec   :  { %v1862_v24 = vpop.f32.mrb[18].mxu1 }
0x15ed   :  { %v1866_v25 = vadd.f32 %v1862_v24, %v4143_v48  ;;  %v3104_v28 = vpop.f32.mrb[19].mxu1 }
0x15ef   :  { %3671 = vtanh.f32 %v1866_v25  ;;  %v2912_v34 = vmul.f32 -1.442695, %v1866_v25 }
0x15f1   :  { %3673 = vpow2.f32 %v2912_v34 }
0x15f9   :  { %v3672_v31 = vpop.eup %3671 }
0x15fa   :  { %1876 = vrot.lane.b32.xlu0 %v3672_v31, %s3728_s24 }
0x15fb   :  { %v3674_v35 = vpop.eup %3673 }
0x15fc   :  { %v1870_v37 = vadd.f32 1.0, %v3674_v35 }
0x15fe   :  { %3675 = vrcp.f32 %v1870_v37 }
0x1608   :  { %v3676_v39 = vpop.eup %3675 }
0x1609   :  { %v1874_v42 = vmul.f32 %v3676_v39, %v1782_v32 }
0x166c   :  { %v1877_v40 = vpop.permute.xlu0 %1876 }
0x166d   :  { %v1879_v41 = vmul.f32 %v3676_v39, %v1877_v40 }
0x166f   :  { %1881 = vrot.lane.b32.xlu1 %v1879_v41, %s3729_s25 }
0x16e1   :  { %v1882_v43 = vpop.permute.xlu1 %1881 }
0x16e2   :  { %v1884_v47 = vadd.f32 %v1882_v43, %v1874_v42 }
0x16e4   :  { %3677 = vtanh.f32 %v1884_v47 }
0x16ee   :  { %v3678_v48 = vpop.eup %3677 }
0x16ef   :  { %1887 = vrot.lane.b32.xlu0 %v3678_v48, %s3728_s24 }
0x1761   :  { %v1888_v49 = vpop.permute.xlu0 %1887 }
0x1762   :  { %v1890_v44 = vmul.f32 %v3676_v39, %v1888_v49 }
0x1764   :  { %1894 = vrot.lane.b32.xlu1 %v1890_v44, %s3729_s25 }
0x17d6   :  { %v1895_v51 = vpop.permute.xlu1 %1894 }
0x17d7   :  { %3114 = vmatmul.mubr.msk.f32.vlgmr.msra.gmra.mrb[20].mxu1 %vm463_vm1, %v1895_v51 }
0x17d8   :  { %3409 = vmatpush3.bf16.msra.mxu1 %v4105_v22  ;;  %3124 = vmatprep.mubr.msk.f32.mxu1 %vm3731_vm3, %v3727_v2 }
0x17d9   :  { %3410 = vmatprep.subr.bf16.mxu1 %v3730_v26 }
0x17dc   :  { %3412 = vmatpush3.bf16.msra.mxu1 %v4116_v29 }
0x17dd   :  { %3413 = vmatprep.subr.bf16.mxu1 %v3730_v26 }
0x18aa   :  { %v1964_v45 = vpop.f32.mrb[20].mxu1 }
0x18ab   :  { %v1968_v56 = vadd.f32 %v1964_v45, %v4141_v46  ;;  %v3115_v55 = vpop.f32.mrb[21].mxu1 }
0x18ad   :  { %3679 = vtanh.f32 %v1968_v56  ;;  %v2914_v5 = vmul.f32 -1.442695, %v1968_v56 }
0x18af   :  { %3681 = vpow2.f32 %v2914_v5 }
0x18b7   :  { %v3680_v57 = vpop.eup %3679 }
0x18b8   :  { %1978 = vrot.lane.b32.xlu0 %v3680_v57, %s3728_s24 }
0x18b9   :  { %v3682_v58 = vpop.eup %3681 }
0x18ba   :  { %v1972_v59 = vadd.f32 1.0, %v3682_v58 }
0x18bc   :  { %3683 = vrcp.f32 %v1972_v59 }
0x18c6   :  { %v3684_v60 = vpop.eup %3683 }
0x18c7   :  { %v1976_v62 = vmul.f32 %v3684_v60, %v1884_v47 }
0x192a   :  { %v1979_v9 = vpop.permute.xlu0 %1978 }
0x192b   :  { %v1981_v61 = vmul.f32 %v3684_v60, %v1979_v9  ;;  %v2407_v9 = vld [vmem:[%s4382_s2 + $0x60] sm:$0xff] }
0x192d   :  { %1983 = vrot.lane.b32.xlu1 %v1981_v61, %s3729_s25  ;;  %v2408_v61 = vld [vmem:[%s4382_s2 + $0x68] sm:$0xff] }
0x199f   :  { %v1984_v63 = vpop.permute.xlu1 %1983 }
0x19a0   :  { %v1986_v0 = vadd.f32 %v1984_v63, %v1976_v62  ;;  %v3432_v62 = vpack.c.bf16 %v2408_v61, %v2407_v9  ;;  %v2409_v63 = vld [vmem:[%s4382_s2 + $0x70] sm:$0xff]  ;;  %v2753_v9 = vld [vmem:[%s4383_s3 + $0x48] sm:$0xff] }
0x19a2   :  { %3685 = vtanh.f32 %v1986_v0 }
0x19ac   :  { %v3686_v46 = vpop.eup %3685 }
0x19ad   :  { %1989 = vrot.lane.b32.xlu0 %v3686_v46, %s3728_s24 }
0x1a1f   :  { %v1990_v1 = vpop.permute.xlu0 %1989 }
0x1a20   :  { %v1992_v3 = vmul.f32 %v3684_v60, %v1990_v1 }
0x1a22   :  { %1996 = vrot.lane.b32.xlu1 %v1992_v3, %s3729_s25  ;;  %v2402_v3 = vld [vmem:[%s4382_s2 + $0x40] sm:$0xff] }
0x1a94   :  { %v1997_v4 = vpop.permute.xlu1 %1996 }
0x1a95   :  { %3125 = vmatmul.mubr.msk.f32.vlgmr.msra.gmra.mrb[22].mxu1 %vm463_vm1, %v1997_v4  ;;  %v2403_v4 = vld [vmem:[%s4382_s2 + $0x48] sm:$0xff] }
0x1a96   :  { %3415 = vmatpush3.bf16.msra.mxu1 %v4105_v22  ;;  %3135 = vmatprep.mubr.msk.f32.mxu1 %vm3731_vm3, %v3727_v2 }
0x1a97   :  { %3416 = vmatprep.subr.bf16.mxu1 %v3730_v26 }
0x1a9a   :  { %3418 = vmatpush3.bf16.msra.mxu1 %v4116_v29 }
0x1a9b   :  { %3419 = vmatprep.subr.bf16.mxu1 %v3730_v26 }
0x1b68   :  { %v2066_v6 = vpop.f32.mrb[22].mxu1 }
0x1b69   :  { %v2070_v7 = vadd.f32 %v2066_v6, %v4147_v53  ;;  %v3126_v10 = vpop.f32.mrb[23].mxu1  ;;  %v3438_v6 = vpack.c.bf16 %v2403_v4, %v2402_v3  ;;  %v2757_v3 = vld [vmem:[%s4383_s3 + $0x68] sm:$0xff] }
0x1b6a   :  { %v2405_v10 = vld [vmem:[%s4382_s2 + $0x58] sm:$0xff] }
0x1b6b   :  { %3687 = vtanh.f32 %v2070_v7  ;;  %v2916_v8 = vmul.f32 -1.442695, %v2070_v7  ;;  %v2404_v7 = vld [vmem:[%s4382_s2 + $0x50] sm:$0xff] }
0x1b6d   :  { %3689 = vpow2.f32 %v2916_v8 }
0x1b75   :  { %v3688_v11 = vpop.eup %3687 }
0x1b76   :  { %2080 = vrot.lane.b32.xlu0 %v3688_v11, %s3728_s24  ;;  %v3441_v11 = vpack.c.bf16 %v2405_v10, %v2404_v7  ;;  %v2760_v10 = vld [vmem:[%s4383_s3 + $0x80] sm:$0xff] }
0x1b77   :  { %v3690_v14 = vpop.eup %3689 }
0x1b78   :  { %v2074_v12 = vadd.f32 1.0, %v3690_v14 }
0x1b7a   :  { %3691 = vrcp.f32 %v2074_v12 }
0x1b84   :  { %v3692_v13 = vpop.eup %3691 }
0x1b85   :  { %v2078_v15 = vmul.f32 %v3692_v13, %v1986_v0  ;;  %v2410_v0 = vld [vmem:[%s4382_s2 + $0x78] sm:$0xff] }
0x1b86   :  { %v3435_v1 = vpack.c.bf16 %v2410_v0, %v2409_v63  ;;  %v2755_v63 = vld [vmem:[%s4383_s3 + $0x58] sm:$0xff] }
0x1be8   :  { %v2081_v30 = vpop.permute.xlu0 %2080 }
0x1be9   :  { %v2083_v20 = vmul.f32 %v3692_v13, %v2081_v30 }
0x1beb   :  { %2085 = vrot.lane.b32.xlu1 %v2083_v20, %s3729_s25 }
0x1c5d   :  { %v2086_v16 = vpop.permute.xlu1 %2085 }
0x1c5e   :  { %v2088_v17 = vadd.f32 %v2086_v16, %v2078_v15  ;;  %v2925_v15 = vld [vmem:[%s4381_s4 + $0x5] ss:$0 sm:$0xff] }
0x1c60   :  { %3693 = vtanh.f32 %v2088_v17 }
0x1c6a   :  { %v3694_v53 = vpop.eup %3693 }
0x1c6b   :  { %2091 = vrot.lane.b32.xlu0 %v3694_v53, %s3728_s24 }
0x1cdd   :  { %v2092_v21 = vpop.permute.xlu0 %2091 }
0x1cde   :  { %v2094_v27 = vmul.f32 %v3692_v13, %v2092_v21 }
0x1ce0   :  { %2098 = vrot.lane.b32.xlu1 %v2094_v27, %s3729_s25 }
0x1d52   :  { %v2099_v32 = vpop.permute.xlu1 %2098 }
0x1d53   :  { %3136 = vmatmul.mubr.msk.f32.vlgmr.msra.gmra.mrb[24].mxu1 %vm463_vm1, %v2099_v32 }
0x1d54   :  { %3421 = vmatpush3.bf16.msra.mxu1 %v4105_v22  ;;  %3146 = vmatprep.mubr.msk.f32.mxu1 %vm3731_vm3, %v3727_v2 }
0x1d55   :  { %3422 = vmatprep.subr.bf16.mxu1 %v3730_v26 }
0x1d58   :  { %3424 = vmatpush3.bf16.msra.mxu1 %v4116_v29 }
0x1d59   :  { %3425 = vmatprep.subr.bf16.mxu1 %v3730_v26 }
0x1e26   :  { %v2168_v18 = vpop.f32.mrb[24].mxu1 }
0x1e27   :  { %v2172_v33 = vadd.f32 %v2168_v18, %v4145_v50  ;;  %v3137_v19 = vpop.f32.mrb[25].mxu1 }
0x1e29   :  { %3695 = vtanh.f32 %v2172_v33  ;;  %v2918_v24 = vmul.f32 -1.442695, %v2172_v33 }
0x1e2b   :  { %3697 = vpow2.f32 %v2918_v24 }
0x1e33   :  { %v3696_v23 = vpop.eup %3695 }
0x1e34   :  { %2182 = vrot.lane.b32.xlu0 %v3696_v23, %s3728_s24 }
0x1e35   :  { %v3698_v25 = vpop.eup %3697 }
0x1e36   :  { %v2176_v28 = vadd.f32 1.0, %v3698_v25 }
0x1e38   :  { %3699 = vrcp.f32 %v2176_v28 }
0x1e42   :  { %v3700_v31 = vpop.eup %3699 }
0x1e43   :  { %v2180_v37 = vmul.f32 %v3700_v31, %v2088_v17 }
0x1ea6   :  { %v2183_v34 = vpop.permute.xlu0 %2182 }
0x1ea7   :  { %v2185_v35 = vmul.f32 %v3700_v31, %v2183_v34 }
0x1ea9   :  { %2187 = vrot.lane.b32.xlu1 %v2185_v35, %s3729_s25 }
0x1f1b   :  { %v2188_v39 = vpop.permute.xlu1 %2187 }
0x1f1c   :  { %v2190_v40 = vadd.f32 %v2188_v39, %v2180_v37 }
0x1f1e   :  { %3701 = vtanh.f32 %v2190_v40 }
0x1f28   :  { %v3702_v50 = vpop.eup %3701 }
0x1f29   :  { %2193 = vrot.lane.b32.xlu0 %v3702_v50, %s3728_s24  ;;  %v2590_v50 = vld [vmem:[%s4383_s3 + $0x28] sm:$0xff] }
0x1f9b   :  { %v2194_v41 = vpop.permute.xlu0 %2193 }
0x1f9c   :  { %v2196_v42 = vmul.f32 %v3700_v31, %v2194_v41  ;;  %v2591_v41 = vld [vmem:[%s4383_s3 + $0x30] sm:$0xff] }
0x1f9e   :  { %2200 = vrot.lane.b32.xlu1 %v2196_v42, %s3729_s25 }
0x2010   :  { %v2201_v43 = vpop.permute.xlu1 %2200 }
0x2011   :  { %3147 = vmatmul.mubr.msk.f32.vlgmr.msra.gmra.mrb[26].mxu1 %vm463_vm1, %v2201_v43  ;;  %v2592_v43 = vld [vmem:[%s4383_s3 + $0x38] sm:$0xff] }
0x2012   :  { %3427 = vmatpush3.bf16.msra.mxu1 %v4105_v22  ;;  %3157 = vmatprep.mubr.msk.f32.mxu1 %vm3731_vm3, %v3727_v2 }
0x2013   :  { %3428 = vmatprep.subr.bf16.mxu1 %v3730_v26 }
0x2016   :  { %3430 = vmatpush3.bf16.msra.mxu1 %v4116_v29 }
0x2017   :  { %3431 = vmatprep.subr.bf16.mxu1 %v3730_v26 }
0x20e4   :  { %v2270_v47 = vpop.f32.mrb[26].mxu1 }
0x20e5   :  { %v2274_v48 = vadd.f32 %v2270_v47, %v4151_v54  ;;  %v3148_v49 = vpop.f32.mrb[27].mxu1  ;;  %v3447_v47 = vpack.c.bf16 %v2592_v43, %v2591_v41 }
0x20e7   :  { %3703 = vtanh.f32 %v2274_v48  ;;  %v2920_v51 = vmul.f32 -1.442695, %v2274_v48 }
0x20e9   :  { %3705 = vpow2.f32 %v2920_v51 }
0x20f1   :  { %v3704_v44 = vpop.eup %3703 }
0x20f2   :  { %2284 = vrot.lane.b32.xlu0 %v3704_v44, %s3728_s24 }
0x20f3   :  { %v3706_v22 = vpop.eup %3705 }
0x20f4   :  { %v2278_v45 = vadd.f32 1.0, %v3706_v22 }
0x20f6   :  { %3707 = vrcp.f32 %v2278_v45 }
0x2100   :  { %v3708_v56 = vpop.eup %3707 }
0x2101   :  { %v2282_v29 = vmul.f32 %v3708_v56, %v2190_v40  ;;  %v2589_v40 = vld [vmem:[%s4383_s3 + $0x20] sm:$0xff] }
0x2102   :  { %v3444_v42 = vpack.c.bf16 %v2590_v50, %v2589_v40 }
0x2164   :  { %v2285_v55 = vpop.permute.xlu0 %2284 }
0x2165   :  { %v2287_v57 = vmul.f32 %v3708_v56, %v2285_v55  ;;  %v2585_v55 = vld [vmem:[%s4383_s3] sm:$0xff] }
0x2167   :  { %2289 = vrot.lane.b32.xlu1 %v2287_v57, %s3729_s25  ;;  %v2586_v57 = vld [vmem:[%s4383_s3 + $0x8] sm:$0xff] }
0x21d9   :  { %v2290_v5 = vpop.permute.xlu1 %2289 }
0x21da   :  { %v4226_v58 = vadd.f32 %v2290_v5, %v2282_v29  ;;  %v3450_v29 = vpack.c.bf16 %v2586_v57, %v2585_v55  ;;  %v2587_v5 = vld [vmem:[%s4383_s3 + $0x10] sm:$0xff] }
0x21dc   :  { %3709 = vtanh.f32 %v4226_v58 }
0x21e6   :  { %v3710_v54 = vpop.eup %3709 }
0x21e7   :  { %2295 = vrot.lane.b32.xlu0 %v3710_v54, %s3728_s24 }
0x2259   :  { %v2296_v59 = vpop.permute.xlu0 %2295 }
0x225a   :  { %v2298_v60 = vmul.f32 %v3708_v56, %v2296_v59 }
0x225c   :  { %2302 = vrot.lane.b32.xlu1 %v2298_v60, %s3729_s25  ;;  %v2752_v60 = vld [vmem:[%s4383_s3 + $0x40] sm:$0xff] }
0x225d   :  { %v3456_v61 = vpack.c.bf16 %v2753_v9, %v2752_v60 }
0x22ce   :  { %v2303_v46 = vpop.permute.xlu1 %2302 }
0x22cf   :  { %3158 = vmatmul.mubr.msk.f32.vlgmr.msra.gmra.mrb[28].mxu1 %vm463_vm1, %v2303_v46 }
0x22d0   :  { %3433 = vmatpush3.bf16.msra.mxu1 %v3432_v62  ;;  %3168 = vmatprep.mubr.msk.f32.mxu1 %vm3731_vm3, %v3727_v2  ;;  %v2754_v62 = vld [vmem:[%s4383_s3 + $0x50] sm:$0xff] }
0x22d1   :  { %3434 = vmatprep.subr.bf16.mxu1 %v3730_v26  ;;  %v3459_v46 = vpack.c.bf16 %v2755_v63, %v2754_v62 }
0x22d4   :  { %3436 = vmatpush3.bf16.msra.mxu1 %v3435_v1  ;;  %v2756_v1 = vld [vmem:[%s4383_s3 + $0x60] sm:$0xff] }
0x22d5   :  { %3437 = vmatprep.subr.bf16.mxu1 %v3730_v26  ;;  %v3462_v4 = vpack.c.bf16 %v2757_v3, %v2756_v1 }
0x22d7   :  { %3169 = vmatmul.mubr.msk.f32.vlgmr.msra.gmra.mrb[30].mxu1 %vm463_vm1, %v4100_v36 }
0x22d8   :  { %3439 = vmatpush3.bf16.msra.mxu1 %v3438_v6  ;;  %3179 = vmatprep.mubr.msk.f32.mxu1 %vm3731_vm3, %v3727_v2  ;;  %v2758_v6 = vld [vmem:[%s4383_s3 + $0x70] sm:$0xff] }
0x22d9   :  { %3440 = vmatprep.subr.bf16.mxu1 %v3730_v26 }
0x22dc   :  { %3442 = vmatpush3.bf16.msra.mxu1 %v3441_v11  ;;  %v2761_v11 = vld [vmem:[%s4383_s3 + $0x88] sm:$0xff] }
0x22dd   :  { %3443 = vmatprep.subr.bf16.mxu1 %v3730_v26 }
0x22df   :  { %3180 = vmatmul.mubr.msk.f32.vlgmr.msra.gmra.mrb[32].mxu1 %vm463_vm1, %v4125_v38 }
0x22e0   :  { %3190 = vmatprep.mubr.msk.f32.mxu1 %vm3731_vm3, %v3727_v2  ;;  %3445 = vmatpush3.bf16.msra.mxu1 %v3444_v42 }
0x22e1   :  { %3446 = vmatprep.subr.bf16.mxu1 %v3730_v26 }
0x22e4   :  { %3448 = vmatpush3.bf16.msra.mxu1 %v3447_v47 }
0x22e5   :  { %3449 = vmatprep.subr.bf16.mxu1 %v3730_v26 }
0x23a2   :  { %v2372_v8 = vpop.f32.mrb[28].mxu1 }
0x23a3   :  { %v2376_v14 = vadd.f32 %v2372_v8, %v4149_v52  ;;  %v3159_v36 = vpop.f32.mrb[29].mxu1  ;;  %v3468_v8 = vpack.c.bf16 %v2761_v11, %v2760_v10 }
0x23a4   :  { %v2763_v36 = vld [vmem:[%s4383_s3 + $0x98] sm:$0xff] }
0x23a5   :  { %3711 = vtanh.f32 %v2376_v14  ;;  %v2922_v52 = vmul.f32 -1.442695, %v2376_v14  ;;  %v2762_v14 = vld [vmem:[%s4383_s3 + $0x90] sm:$0xff] }
0x23aa   :  { %v2480_v12 = vpop.f32.mrb[30].mxu1 }
0x23ab   :  { %v3170_v13 = vpop.f32.mrb[31].mxu1 }
0x23ac   :  { %v2764_v13 = vld [vmem:[%s4383_s3 + $0xa0] sm:$0xff] }
0x23af   :  { %v3712_v30 = vpop.eup %3711 }
0x23b0   :  { %2386 = vrot.lane.b32.xlu0 %v3712_v30, %s3728_s24  ;;  %v2765_v30 = vld [vmem:[%s4383_s3 + $0xa8] sm:$0xff] }
0x23b2   :  { %v2553_v20 = vpop.f32.mrb[32].mxu1 }
0x23b3   :  { %v2554_v16 = vadd.f32 %v2553_v20, %v2480_v12  ;;  %v3181_v38 = vpop.f32.mrb[33].mxu1  ;;  %v3471_v12 = vpack.c.bf16 %v2763_v36, %v2762_v14  ;;  %v3474_v20 = vpack.c.bf16 %v2765_v30, %v2764_v13 }
0x23b5   :  { %v2564_v17 = vadd.f32 %v2925_v15, %v2554_v16  ;;  %v2766_v15 = vld [vmem:[%s4383_s3 + $0xb0] sm:$0xff]  ;;  %v2767_v16 = vld [vmem:[%s4383_s3 + $0xb8] sm:$0xff] }
0x23b6   :  { %v3477_v38 = vpack.c.bf16 %v2767_v16, %v2766_v15 }
0x23b7   :  { %3713 = vtanh.f32 %v2564_v17  ;;  %v2926_v32 = vmul.f32 -1.442695, %v2564_v17 }
0x23b8   :  { %3715 = vpow2.f32 %v2922_v52 }
0x23c1   :  { %v3714_v53 = vpop.eup %3713 }
0x23c2   :  { %2573 = vrot.lane.b32.xlu1 %v3714_v53, %s3728_s24  ;;  %v3716_v21 = vpop.eup %3715 }
0x23c3   :  { %v2380_v27 = vadd.f32 1.0, %v3716_v21  ;;  %v2929_v21 = vld [vmem:[%s4381_s4 + $0x6] ss:$0 sm:$0xff] }
0x23c5   :  { %3717 = vrcp.f32 %v2380_v27 }
0x23c6   :  { %3719 = vpow2.f32 %v2926_v32 }
0x23cf   :  { %v3718_v18 = vpop.eup %3717 }
0x23d0   :  { %v3720_v19 = vpop.eup %3719  ;;  %v2384_v35 = vmul.f32 %v3718_v18, %v4226_v58  ;;  %v2588_v58 = vld [vmem:[%s4383_s3 + $0x18] sm:$0xff] }
0x23d1   :  { %v2568_v24 = vadd.f32 1.0, %v3720_v19  ;;  %v3453_v59 = vpack.c.bf16 %v2588_v58, %v2587_v5 }
0x23d3   :  { %3721 = vrcp.f32 %v2568_v24 }
0x23dd   :  { %v3722_v25 = vpop.eup %3721 }
0x2422   :  { %v2387_v33 = vpop.permute.xlu0 %2386 }
0x2423   :  { %v2389_v23 = vmul.f32 %v3718_v18, %v2387_v33  ;;  %v2930_v33 = vld [vmem:[%s4381_s4 + $0x7] ss:$0 sm:$0xff] }
0x2425   :  { %2391 = vrot.lane.b32.xlu0 %v2389_v23, %s3729_s25 }
0x2434   :  { %v2574_v28 = vpop.permute.xlu1 %2573 }
0x2435   :  { %v2576_v31 = vmul.f32 %v3722_v25, %v2574_v28 }
0x2437   :  { %3723 = vtanh.f32 %v2576_v31 }
0x2441   :  { %v3724_v34 = vpop.eup %3723 }
0x2442   :  { %2579 = vrot.lane.b32.xlu1 %v3724_v34, %s3732_s18 }
0x2497   :  { %v2392_v37 = vpop.permute.xlu0 %2391 }
0x2498   :  { %v2394_v39 = vadd.f32 %v2392_v37, %v2384_v35 }
0x249a   :  { %3725 = vtanh.f32 %v2394_v39 }
0x24a4   :  { %v3726_v48 = vpop.eup %3725 }
0x24a5   :  { %2397 = vrot.lane.b32.xlu0 %v3726_v48, %s3728_s24 }
0x24b4   :  { %v2580_v49 = vpop.permute.xlu1 %2579 }
0x24b5   :  { %v2582_v44 = vmul.f32 %v3722_v25, %v2580_v49 }
0x24b7   :  { %v2584_v51 = vmax.f32 %v2582_v44, 0.0 }
0x24b9   :  { %2594 = vrot.lane.b32.xlu1 %v2584_v51, %s3729_s25 }
0x2517   :  { %v2398_v22 = vpop.permute.xlu0 %2397 }
0x2518   :  { %v2400_v45 = vmul.f32 %v3718_v18, %v2398_v22 }
0x251a   :  { %v2583_v56 = vmax.f32 %v2400_v45, 0.0 }
0x251c   :  { %2669 = vrot.lane.b32.xlu0 %v2583_v56, %s3729_s25 }
0x252b   :  { %v2595_v54 = vpop.permute.xlu1 %2594 }
0x252c   :  { %3191 = vmatmul.mubr.msk.f32.vlgmr.msra.gmra.mrb[34].mxu1 %vm463_vm1, %v2595_v54 }
0x252d   :  { %3451 = vmatpush3.bf16.msra.mxu1 %v3450_v29  ;;  %3201 = vmatprep.mubr.msk.f32.mxu1 %vm3731_vm3, %v3727_v2 }
0x252e   :  { %3452 = vmatprep.subr.bf16.mxu1 %v3730_v26 }
0x2531   :  { %3454 = vmatpush3.bf16.msra.mxu1 %v3453_v59 }
0x2532   :  { %3455 = vmatprep.subr.bf16.mxu1 %v3730_v26 }
0x258e   :  { %v2670_v0 = vpop.permute.xlu0 %2669 }
0x258f   :  { %3202 = vmatmul.mubr.msk.f32.vlgmr.msra.gmra.mrb[36].mxu1 %vm463_vm1, %v2670_v0 }
0x2590   :  { %3457 = vmatpush3.bf16.msra.mxu1 %v3456_v61  ;;  %3236 = vmatprep.mubr.msk.f32.mxu1 %vm3731_vm3, %v3727_v2  ;;  %v2759_v2 = vld [vmem:[%s4383_s3 + $0x78] sm:$0xff] }
0x2591   :  { %3458 = vmatprep.subr.bf16.mxu1 %v3730_v26  ;;  %v3465_v7 = vpack.c.bf16 %v2759_v2, %v2758_v6 }
0x2594   :  { %3460 = vmatpush3.bf16.msra.mxu1 %v3459_v46 }
0x2595   :  { %3461 = vmatprep.subr.bf16.mxu1 %v3730_v26 }
0x2598   :  { %3463 = vmatpush3.bf16.msra.mxu1 %v3462_v4 }
0x2599   :  { %3464 = vmatprep.subr.bf16.mxu1 %v3730_v26 }
0x259c   :  { %3466 = vmatpush3.bf16.msra.mxu1 %v3465_v7 }
0x259d   :  { %3467 = vmatprep.subr.bf16.mxu1 %v3730_v26 }
0x25a0   :  { %3469 = vmatpush3.bf16.msra.mxu1 %v3468_v8 }
0x25a1   :  { %3470 = vmatprep.subr.bf16.mxu1 %v3730_v26 }
0x25a4   :  { %3472 = vmatpush3.bf16.msra.mxu1 %v3471_v12 }
0x25a5   :  { %3473 = vmatprep.subr.bf16.mxu1 %v3730_v26 }
0x25a8   :  { %3475 = vmatpush3.bf16.msra.mxu1 %v3474_v20 }
0x25a9   :  { %3476 = vmatprep.subr.bf16.mxu1 %v3730_v26 }
0x25ac   :  { %3478 = vmatpush3.bf16.msra.mxu1 %v3477_v38 }
0x25ff   :  { %v2664_v17 = vpop.f32.mrb[34].mxu1 }
0x2600   :  { %v3192_v53 = vpop.f32.mrb[35].mxu1 }
0x2662   :  { %v2739_v52 = vpop.f32.mrb[36].mxu1 }
0x2663   :  { %v2740_v27 = vadd.f32 %v2739_v52, %v2664_v17  ;;  %v3203_v32 = vpop.f32.mrb[37].mxu1 }
0x2665   :  { %v2750_v26 = vadd.f32 %v2929_v21, %v2740_v27 }
0x2667   :  { %v2751_v18 = vmax.f32 %v2750_v26, 0.0 }
0x2669   :  { %3237 = vmatmul.mubr.f32.vlgmr.msra.gmra.mrb[38].mxu1 %v2751_v18 }
0x273c   :  { %v2834_v19 = vpop.f32.mrb[38].mxu1 }
0x273d   :  { %v2845_v23 = vadd.f32 %v2930_v33, %v2834_v19  ;;  %v3238_v24 = vpop.f32.mrb[39].mxu1 }
0x273f   :  { %2847 = vst.msk [vmem:[%s4384_s5] sm:$0xff] %vm2846_vm4, %v2845_v23 }

</bundles_post_ra>
